<compile_context>
chip_gen: v7x
topology: tpu7x:2x2x1
jax: 0.10.0
libtpu: 0.0.40
codegen_flags: <defaults>
</compile_context>

<pallas_src>
import math

import jax
import jax.numpy as jnp
from jax import lax
from jax.experimental import pallas as pl
from jax.experimental.pallas import tpu as pltpu

MIN_NORM = 1e-15   # Hyperboloid.min_norm (hgcn reference implementation)
EPS = 1e-7         # Hyperboloid.eps[float32]


def _round_up(x, m):
    return ((x + m - 1) // m) * m


def _vmem_capacity_bytes():
    """Physical VMEM per TensorCore, with a conservative (v7x) fallback."""
    try:
        return int(pltpu.get_tpu_info().vmem_capacity_bytes)
    except Exception:
        return 64 << 20


# --------------------------------------------------------------------------
# Kernel 1: fused item-embedding assembly
#   out[:, 0:d]   = item_emb_id
#   out[:, d:2d]  = image_feats @ W_i^T + b_i
#   out[:, 2d:3d] = text_feats  @ W_t^T + b_t
# image/text features are concatenated along K and W_i/W_t stacked into one
# (1152, DP) weight so a single MXU stream covers both projections.
# --------------------------------------------------------------------------
def item_assembly_kernel(feat_ref, w_ref, id_ref, b_ref, o_ref):
    o_ref[...] = (
        id_ref[...]
        + b_ref[...]
        + jnp.dot(feat_ref[...], w_ref[...], preferred_element_type=jnp.float32)
    )


def run_item_assembly(feats, w_pad, id_pad, bias_row, *, tm, vmem_cap):
    ni_pad, f_all = feats.shape
    dp = w_pad.shape[1]
    n_tiles = ni_pad // tm
    est = (2 * tm * f_all * 2          # double-buffered bf16 feats
           + 2 * tm * dp * 4           # double-buffered id tile (f32)
           + f_all * dp * 2 + dp * 4   # resident weights + bias
           + 2 * tm * dp * 4)          # double-buffered output
    vmem_limit = int(min(max(est + (4 << 20), 32 << 20), vmem_cap - (4 << 20)))
    return pl.pallas_call(
        item_assembly_kernel,
        out_shape=jax.ShapeDtypeStruct((ni_pad, dp), jnp.float32),
        grid_spec=pltpu.PrefetchScalarGridSpec(
            num_scalar_prefetch=0,
            grid=(n_tiles,),
            in_specs=[
                pl.BlockSpec((tm, f_all), lambda i: (i, 0)),
                pl.BlockSpec((f_all, dp), lambda i: (0, 0)),
                pl.BlockSpec((tm, dp), lambda i: (i, 0)),
                pl.BlockSpec((1, dp), lambda i: (0, 0)),
            ],
            out_specs=pl.BlockSpec((tm, dp), lambda i: (i, 0)),
        ),
        compiler_params=pltpu.CompilerParams(
            dimension_semantics=("parallel",),
            vmem_limit_bytes=vmem_limit,
        ),
    )(feats, w_pad, id_pad, bias_row)


# --------------------------------------------------------------------------
# Kernel 2 (prologue): row-tiled proj_tan0 + expmap0 of the fused ego -> bf16 X0
# --------------------------------------------------------------------------
def make_expmap0_kernel(curvature, d, dp):
    sqrt_k = 1.0 / math.sqrt(curvature)
    big_k = 1.0 / curvature

    def kernel(ego_ref, seg_ref, x0_ref):
        tm = ego_ref.shape[0]
        col = lax.broadcasted_iota(jnp.int32, (tm, dp), 1)
        is0 = (col == 0) | (col == d) | (col == 2 * d)   # time-like coordinates
        ego = ego_ref[...]
        u = jnp.where(is0, 0.0, ego)                      # proj_tan0
        seg = seg_ref[...]
        # per-channel squared spatial norm, broadcast back to every column
        x_sq = jnp.dot(u * u, seg, preferred_element_type=jnp.float32)
        x_norm = jnp.maximum(jnp.sqrt(x_sq), MIN_NORM)
        theta = jnp.minimum(x_norm / sqrt_k, 80.0)         # exp-overflow guard
        e_p = jnp.exp(theta)
        e_m = pl.reciprocal(e_p)                           # exp(-theta)
        sinh_t = 0.5 * (e_p - e_m)
        # stable sinh(theta)/x_norm -> 1/sqrt_k as theta -> 0
        sinh_ratio = jnp.where(theta < 1e-3, 1.0 / sqrt_k, sinh_t / x_norm)
        res = sqrt_k * sinh_ratio * u                      # spatial coords
        # proj(): time coordinate recomputed from the spatial norm
        y_sq = jnp.dot(res * res, seg, preferred_element_type=jnp.float32)
        t_coord = jnp.sqrt(jnp.maximum(big_k + y_sq, EPS))
        x0_ref[...] = jnp.where(is0, t_coord, res).astype(jnp.bfloat16)

    return kernel


def run_expmap0(ego_pad, seg, *, curvature, d, dp, tm):
    n_pad = ego_pad.shape[0]
    return pl.pallas_call(
        make_expmap0_kernel(curvature, d, dp),
        out_shape=jax.ShapeDtypeStruct((n_pad, dp), jnp.bfloat16),
        grid_spec=pltpu.PrefetchScalarGridSpec(
            num_scalar_prefetch=0,
            grid=(n_pad // tm,),
            in_specs=[
                pl.BlockSpec((tm, dp), lambda i: (i, 0)),
                pl.BlockSpec((dp, dp), lambda i: (0, 0)),
            ],
            out_specs=pl.BlockSpec((tm, dp), lambda i: (i, 0)),
        ),
        compiler_params=pltpu.CompilerParams(
            dimension_semantics=("parallel",),
        ),
    )(ego_pad, seg)


# --------------------------------------------------------------------------
# Kernel 3: fused 3-channel hyperbolic propagation
#   grid = (n_layers, K-tiles of A's contraction axis)
#   X0 arrives as a raw HBM ref (pl.ANY) and is DMA'd once into a bf16 scratch;
#   the output block doubles as the layer-mean accumulator.
# --------------------------------------------------------------------------
def make_inference_kernel(curvature, n_layers, d, dp, tk):
    sqrt_k = 1.0 / math.sqrt(curvature)

    def time_mask(n_pad):
        # columns 0, d, 2d are the time-like coordinate of each fused channel
        col = lax.broadcasted_iota(jnp.int32, (n_pad, dp), 1)
        return (col == 0) | (col == d) | (col == 2 * d)

    def kernel(x0_hbm, a_ref, seg_ref, scale_ref, o_ref, x_buf, layer_acc):
        l = pl.program_id(0)
        k = pl.program_id(1)
        nl = pl.num_programs(0)
        nk = pl.num_programs(1)
        n_pad = o_ref.shape[0]

        # ---- first grid step: pull X0 into the bf16 working buffer ----
        @pl.when((l == 0) & (k == 0))
        def _():
            pltpu.sync_copy(x0_hbm, x_buf)
            o_ref[...] = jnp.zeros_like(o_ref)      # layer-mean accumulator

        @pl.when(k == 0)
        def _():
            layer_acc[...] = jnp.zeros_like(layer_acc)

        # ---- graph aggregation: layer_acc += A[:, k-tile] @ X[k-tile, :] ----
        start = pl.multiple_of(k * tk, tk)
        layer_acc[...] += jnp.dot(a_ref[...], x_buf[pl.ds(start, tk), :],
                                  preferred_element_type=jnp.float32)

        # ---- end of a layer: hand the new X to the next layer ----
        @pl.when(k == nk - 1)
        def _():
            new_x = layer_acc[...]
            o_ref[...] += new_x                      # accumulate layer mean
            x_buf[...] = new_x.astype(jnp.bfloat16)

        # ---- final step: layer mean -> logmap0 -> per-channel scale ----
        @pl.when((l == nl - 1) & (k == nk - 1))
        def _():
            is0 = time_mask(n_pad)
            seg = seg_ref[...]
            mean_e = o_ref[...] * (1.0 / float(n_layers))
            y = jnp.where(is0, 0.0, mean_e)
            y_sq = jnp.dot(y * y, seg, preferred_element_type=jnp.float32)
            y_norm = jnp.maximum(jnp.sqrt(y_sq), MIN_NORM)
            x0 = jnp.dot(jnp.where(is0, mean_e, 0.0), seg,
                         preferred_element_type=jnp.float32)
            theta = jnp.maximum(x0 / sqrt_k, 1.0 + EPS)
            arcosh = jnp.log(theta + jnp.sqrt(theta * theta - 1.0))
            out = jnp.where(is0, 0.0, sqrt_k * arcosh * y / y_norm)
            o_ref[...] = scale_ref[...] * out

    return kernel


def run_inference(x0_bf16, a_pad, seg, scale_row, *,
                  curvature, n_layers, d, dp, tk, vmem_cap):
    n_pad = x0_bf16.shape[0]
    k_tiles = n_pad // tk
    est = (n_pad * dp * 4            # output (resident accumulator)
           + n_pad * dp * 2          # x_buf (bf16)
           + n_pad * dp * 4          # layer_acc
           + 2 * n_pad * tk * 2      # double-buffered A column strip (bf16)
           + 2 * dp * dp * 4 + 2 * dp * 4)
    vmem_limit = int(min(max(est + (8 << 20), 32 << 20), vmem_cap - (4 << 20)))
    return pl.pallas_call(
        make_inference_kernel(curvature, n_layers, d, dp, tk),
        out_shape=jax.ShapeDtypeStruct((n_pad, dp), jnp.float32),
        grid_spec=pltpu.PrefetchScalarGridSpec(
            num_scalar_prefetch=0,
            grid=(n_layers, k_tiles),
            in_specs=[
                pl.BlockSpec(memory_space=pl.ANY),                # X0 stays in HBM
                pl.BlockSpec((n_pad, tk), lambda l, k: (0, k)),   # A column strip
                pl.BlockSpec((dp, dp), lambda l, k: (0, 0)),      # segment-sum mat
                pl.BlockSpec((1, dp), lambda l, k: (0, 0)),       # channel scales
            ],
            out_specs=pl.BlockSpec((n_pad, dp), lambda l, k: (0, 0)),
            scratch_shapes=[
                pltpu.VMEM((n_pad, dp), jnp.bfloat16),   # x_buf (current layer X)
                pltpu.VMEM((n_pad, dp), jnp.float32),    # layer accumulator
            ],
        ),
        compiler_params=pltpu.CompilerParams(
            dimension_semantics=("arbitrary", "arbitrary"),
            vmem_limit_bytes=vmem_limit,
        ),
    )(x0_bf16, a_pad, seg, scale_row)


# --------------------------------------------------------------------------
# Kernel 4: BPR + channel + KL loss
#   indices scalar-prefetched into SMEM; the (n_pad, DP) embedding slab stays
#   in HBM (pl.ANY) and only the 3*batch needed rows are DMA-gathered.
# --------------------------------------------------------------------------
def make_loss_kernel(d, tau, channel_weight, kl_weight, batch, bpad):
    inv_tau = 1.0 / tau

    def kernel(u_idx_ref, p_idx_ref, n_idx_ref, all_hbm, loss_ref, rows_buf):
        # TODO(synk): gather loop is unrolled over the (small, static) batch;
        #             per-row blocking DMAs are fine at this size.
        for i in range(batch):
            pltpu.sync_copy(all_hbm.at[pl.ds(u_idx_ref[i], 1), :],
                            rows_buf.at[pl.ds(i, 1), :])
            pltpu.sync_copy(all_hbm.at[pl.ds(p_idx_ref[i], 1), :],
                            rows_buf.at[pl.ds(bpad + i, 1), :])
            pltpu.sync_copy(all_hbm.at[pl.ds(n_idx_ref[i], 1), :],
                            rows_buf.at[pl.ds(2 * bpad + i, 1), :])

        rows = rows_buf[...]
        pu = rows[0:batch]
        pi = rows[bpad:bpad + batch]
        ni = rows[2 * bpad:2 * bpad + batch]

        def score(a, b, c0):                              # per-channel dot (B,1)
            return jnp.sum(a[:, c0:c0 + d] * b[:, c0:c0 + d],
                           axis=1, keepdims=True)

        ps_id, ns_id = score(pu, pi, 0), score(pu, ni, 0)
        ps_im, ns_im = score(pu, pi, d), score(pu, ni, d)
        ps_tx, ns_tx = score(pu, pi, 2 * d), score(pu, ni, 2 * d)
        ps_f = ps_id + ps_im + ps_tx
        ns_f = ns_id + ns_im + ns_tx

        def bpr(p, n):
            x = p - n
            # -logsigmoid(x) = softplus(-x), stable form
            return jnp.maximum(-x, 0.0) + jnp.log(1.0 + jnp.exp(-jnp.abs(x)))

        cf = bpr(ps_f, ns_f)
        ch = bpr(ps_id, ns_id) + bpr(ps_im, ns_im) + bpr(ps_tx, ns_tx)

        def log_softmax_pair(p, n):
            sp, sn = p * inv_tau, n * inv_tau
            m = jnp.maximum(sp, sn)
            lse = m + jnp.log(jnp.exp(sp - m) + jnp.exp(sn - m))
            return sp - lse, sn - lse

        lfp, lfn = log_softmax_pair(ps_f, ns_f)
        fp, fn = jnp.exp(lfp), jnp.exp(lfn)

        def kl(pair):
            lqp, lqn = pair
            return fp * (lfp - lqp) + fn * (lfn - lqn)

        kl_total = (kl(log_softmax_pair(ps_id, ns_id))
                    + kl(log_softmax_pair(ps_im, ns_im))
                    + kl(log_softmax_pair(ps_tx, ns_tx)))

        # NOTE: l2_loss is computed in the reference forward but never added to
        # the returned loss, so it is omitted here.
        total = cf + channel_weight * ch + kl_weight * kl_total
        loss_ref[...] = jnp.mean(total, keepdims=True)

    return kernel


def run_loss(all_out, u_idx, p_idx, n_idx, *, d, tau, channel_weight, kl_weight):
    batch = int(u_idx.shape[0])
    bpad = max(8, _round_up(batch, 8))
    n_pad, dp = all_out.shape
    return pl.pallas_call(
        make_loss_kernel(d, tau, channel_weight, kl_weight, batch, bpad),
        out_shape=jax.ShapeDtypeStruct((1, 1), jnp.float32),
        grid_spec=pltpu.PrefetchScalarGridSpec(
            num_scalar_prefetch=3,
            grid=(1,),
            in_specs=[pl.BlockSpec(memory_space=pl.ANY)],    # slab stays in HBM
            out_specs=pl.BlockSpec((1, 1), lambda i, u, p, n: (0, 0)),
            scratch_shapes=[pltpu.VMEM((3 * bpad, dp), jnp.float32)],
        ),
        compiler_params=pltpu.CompilerParams(
            dimension_semantics=("arbitrary",),
        ),
    )(u_idx, p_idx, n_idx, all_out)


# --------------------------------------------------------------------------
# Model wrapper (deterministic synthetic parameters)
# --------------------------------------------------------------------------
class HSDPallas:
    def __init__(self, key, *, n_users, n_items, embed_size, n_layers,
                 channel_weight, kl_weight, tau, curvature):
        self.n_users = n_users
        self.n_items = n_items
        self.d = embed_size + 1
        self.n_layers = n_layers
        self.channel_weight = channel_weight
        self.kl_weight = kl_weight
        self.tau = tau
        self.c = curvature

        d = self.d
        n_total = n_users + n_items
        self.n_total = n_total
        self.dp = _round_up(3 * d, 128)               # fused, lane-dense feature dim
        self.n_pad = _round_up(n_total, 128)          # padded graph size
        dp = self.dp
        n_pad = self.n_pad

        self.vmem_cap = _vmem_capacity_bytes()

        # ---- derive tk (A contraction tile) from the VMEM budget ----
        # resident slabs: out (f32) + x_buf (bf16) + layer_acc (f32) + small
        resident = n_pad * dp * (4 + 2 + 4) + 2 * dp * dp * 4 + (8 << 20)
        budget = max(self.vmem_cap - (16 << 20), 24 << 20)
        tk = 128
        for m in range(n_pad // 128, 0, -1):
            cand = m * 128
            if n_pad % cand != 0:
                continue
            if resident + 2 * n_pad * cand * 2 <= budget:
                tk = cand
                break
        self.tk = tk                                   # == n_pad -> A fully resident

        # row tile for the expmap0 prologue
        self.tm_rows = 128
        for cand in (1024, 512, 256, 128):
            if n_pad % cand == 0:
                self.tm_rows = cand
                break

        # item-assembly row tile (large tile amortizes per-grid-step overhead)
        self.tm_items = 1024 if n_items >= 1024 else _round_up(max(n_items, 1), 256)
        self.ni_pad = _round_up(n_items, self.tm_items)

        ks = jax.random.split(key, 12)

        def xavier(k, shape):
            fan_out, fan_in = shape
            bound = math.sqrt(6.0 / (fan_in + fan_out))
            return jax.random.uniform(k, shape, jnp.float32, -bound, bound)

        # frozen multimodal features (synthetic stand-ins for image/text feats)
        image_feats = 0.1 * jax.random.normal(ks[0], (n_items, 768), jnp.float32)
        text_feats = 0.1 * jax.random.normal(ks[1], (n_items, 384), jnp.float32)

        # xavier-initialized id / modality embeddings
        self.user_emb_id = xavier(ks[2], (n_users, d))
        self.item_emb_id = xavier(ks[3], (n_items, d))
        self.user_emb_img = xavier(ks[4], (n_users, d))
        self.user_emb_txt = xavier(ks[5], (n_users, d))

        # trans_i: Linear(768, d) ; trans_t: Linear(384, d) (torch-style init)
        def linear_params(kw, kb, fan_in, fan_out):
            bound = 1.0 / math.sqrt(fan_in)
            w = jax.random.uniform(kw, (fan_out, fan_in), jnp.float32, -bound, bound)
            b = jax.random.uniform(kb, (fan_out,), jnp.float32, -bound, bound)
            return w, b

        w_i, b_i = linear_params(ks[6], ks[7], 768, d)
        w_t, b_t = linear_params(ks[8], ks[9], 384, d)

        # weights padded into the fused DP layout, stacked along K, bf16 for MXU
        w_img_pad = jnp.zeros((768, dp), jnp.float32).at[:, d:2 * d].set(w_i.T)
        w_txt_pad = jnp.zeros((384, dp), jnp.float32).at[:, 2 * d:3 * d].set(w_t.T)
        self.w_mm_pad = jnp.concatenate([w_img_pad, w_txt_pad], axis=0
                                        ).astype(jnp.bfloat16)      # (1152, dp)
        self.bias_row = (jnp.zeros((1, dp), jnp.float32)
                         .at[0, d:2 * d].set(b_i)
                         .at[0, 2 * d:3 * d].set(b_t))

        # padded (bf16) multimodal features concatenated along K + item-id block
        feats = jnp.concatenate([image_feats, text_feats], axis=1)   # (n_items, 1152)
        self.feats_p = jnp.zeros((self.ni_pad, 1152), jnp.bfloat16).at[
            :n_items].set(feats.astype(jnp.bfloat16))
        self.item_id_pad = jnp.zeros((self.ni_pad, dp), jnp.float32).at[
            :n_items, :d].set(self.item_emb_id)

        # dense, row-normalized interaction graph (stand-in for sparse A_in),
        # padded to n_pad and stored bf16 for the memory-bound A @ X matmul
        raw = jax.random.uniform(ks[10], (n_total, n_total), jnp.float32)
        mask = (jax.random.uniform(ks[11], (n_total, n_total), jnp.float32) > 0.7)
        vals = raw * mask.astype(jnp.float32)
        a = vals / (jnp.sum(vals, axis=1, keepdims=True) + 1e-8)
        self.A_pad = jnp.zeros((self.n_pad, self.n_pad), jnp.float32).at[
            :n_total, :n_total].set(a).astype(jnp.bfloat16)

        # block-diagonal segment-sum matrix (per-channel norm broadcast) + scales
        col_ids = jnp.arange(dp)
        ch = jnp.where(col_ids < 3 * d, col_ids // d, -1)
        self.seg = ((ch[:, None] == ch[None, :]) & (ch[:, None] >= 0)).astype(
            jnp.float32)
        self.scale_row = jnp.where(
            col_ids < d, 1.0,
            jnp.where(col_ids < 2 * d, 0.15,
                      jnp.where(col_ids < 3 * d, 0.75, 0.0))
        ).reshape(1, dp).astype(jnp.float32)

    # ----- inference(): fused 3-channel hyperbolic embedding propagation -----
    def inference(self):
        item_block = run_item_assembly(
            self.feats_p, self.w_mm_pad, self.item_id_pad, self.bias_row,
            tm=self.tm_items, vmem_cap=self.vmem_cap)[: self.n_items]

        user_block = jnp.concatenate(
            [self.user_emb_id, self.user_emb_img, self.user_emb_txt], axis=1)
        user_block = jnp.pad(user_block, ((0, 0), (0, self.dp - 3 * self.d)))

        ego = jnp.concatenate([user_block, item_block], axis=0)
        ego = jnp.pad(ego, ((0, self.n_pad - self.n_total), (0, 0)))

        # prologue: proj_tan0 + expmap0 -> bf16 X0 (consumed from HBM by kernel 3)
        x0 = run_expmap0(ego, self.seg, curvature=self.c,
                         d=self.d, dp=self.dp, tm=self.tm_rows)

        # fused output: cols [0:d] id, [d:2d] img (x0.15), [2d:3d] txt (x0.75)
        return run_inference(x0, self.A_pad, self.seg, self.scale_row,
                             curvature=self.c, n_layers=self.n_layers,
                             d=self.d, dp=self.dp, tk=self.tk,
                             vmem_cap=self.vmem_cap)

    # ----- forward(): in-kernel row gather + loss -----
    def forward(self, user_ids, item_pos_ids, item_neg_ids):
        all_out = self.inference()
        u_idx = jnp.asarray(user_ids, jnp.int32)
        p_idx = jnp.asarray(item_pos_ids, jnp.int32) + self.n_users
        n_idx = jnp.asarray(item_neg_ids, jnp.int32) + self.n_users
        loss = run_loss(all_out, u_idx, p_idx, n_idx,
                        d=self.d, tau=self.tau,
                        channel_weight=self.channel_weight,
                        kl_weight=self.kl_weight)
        return loss[0, 0]


if __name__ == "__main__":
    key = jax.random.PRNGKey(0)
    n_users, n_items = 12, 20
    embed_size = 15          # embed_dim = 16
    n_layers = 2
    batch = 8

    model = HSDPallas(
        key,
        n_users=n_users, n_items=n_items, embed_size=embed_size,
        n_layers=n_layers, channel_weight=0.5, kl_weight=0.1,
        tau=0.2, curvature=1.0,
    )

    ku, kp, kn = jax.random.split(jax.random.PRNGKey(1), 3)
    user_ids = jax.random.randint(ku, (batch,), 0, n_users)
    item_pos_ids = jax.random.randint(kp, (batch,), 0, n_items)
    item_neg_ids = jax.random.randint(kn, (batch,), 0, n_items)

    loss = model.forward(user_ids, item_pos_ids, item_neg_ids)
    jax.block_until_ready(loss)
    assert bool(jnp.isfinite(loss)), "loss is not finite"
    print("KERNEL_OK")
</pallas_src>

<mosaic_0001>
module attributes {stable_mosaic.version = 11 : i64} {
  func.func @item_assembly_kernel(%arg0: i32, %arg1: memref<256x1152xbf16, #tpu.memory_space<vmem>>, %arg2: memref<1152x128xbf16, #tpu.memory_space<vmem>>, %arg3: memref<256x128xf32, #tpu.memory_space<vmem>>, %arg4: memref<1x128xf32, #tpu.memory_space<vmem>>, %arg5: memref<256x128xf32, #tpu.memory_space<vmem>>) attributes {dimension_semantics = [#tpu.dimension_semantics<parallel>], iteration_bounds = array<i64: 1>, scalar_prefetch = 0 : i64, scratch_operands = 0 : i64, tpu.core_type = #tpu.core_type<tc>, window_params = [{transform_indices = @transform_0, window_bounds = array<i64: 256, 1152>}, {pipeline_mode = #tpu.pipeline_mode<synchronous>, transform_indices = @transform_1, window_bounds = array<i64: 1152, 128>}, {transform_indices = @transform_2, window_bounds = array<i64: 256, 128>}, {pipeline_mode = #tpu.pipeline_mode<synchronous>, transform_indices = @transform_3, window_bounds = array<i64: 1, 128>}, {transform_indices = @transform_4, window_bounds = array<i64: 256, 128>}]} {
    %c0 = arith.constant 0 : index
    %c0_0 = arith.constant 0 : index
    %0 = vector.load %arg3[%c0, %c0_0] : memref<256x128xf32, #tpu.memory_space<vmem>>, vector<256x128xf32>
    %c0_1 = arith.constant 0 : index
    %c0_2 = arith.constant 0 : index
    %1 = vector.load %arg4[%c0_1, %c0_2] : memref<1x128xf32, #tpu.memory_space<vmem>>, vector<1x128xf32>
    %2 = vector.broadcast %1 : vector<1x128xf32> to vector<256x128xf32>
    %3 = arith.addf %0, %2 : vector<256x128xf32>
    %c0_3 = arith.constant 0 : index
    %c0_4 = arith.constant 0 : index
    %4 = vector.load %arg1[%c0_3, %c0_4] : memref<256x1152xbf16, #tpu.memory_space<vmem>>, vector<256x1152xbf16>
    %c0_5 = arith.constant 0 : index
    %c0_6 = arith.constant 0 : index
    %5 = vector.load %arg2[%c0_5, %c0_6] : memref<1152x128xbf16, #tpu.memory_space<vmem>>, vector<1152x128xbf16>
    %cst = arith.constant dense<0.000000e+00> : vector<256x128xf32>
    %6 = tpu.matmul %4, %5, %cst {dimension_numbers = #tpu.dot_dimension_numbers<[1], [0], [0], [1], [0, 0, 1, 1], [], []>} : vector<256x1152xbf16>, vector<1152x128xbf16>, vector<256x128xf32> -> vector<256x128xf32>
    %7 = arith.addf %3, %6 : vector<256x128xf32>
    %c0_7 = arith.constant 0 : index
    %c0_8 = arith.constant 0 : index
    %8 = vector.load %arg5[%c0_7, %c0_8] : memref<256x128xf32, #tpu.memory_space<vmem>>, vector<256x128xf32>
    tpu.vector_store %arg5[%c0_7, %c0_8], %7 {strides = array<i32>} : memref<256x128xf32, #tpu.memory_space<vmem>>, vector<256x128xf32>,
    return
  }
  func.func @transform_0(%arg0: i32) -> (i32, i32) {
    %c0_i32 = arith.constant 0 : i32
    %c0_i32_0 = arith.constant 0 : i32
    return %arg0, %c0_i32 : i32, i32
  }
  func.func @transform_1(%arg0: i32) -> (i32, i32) {
    %c0_i32 = arith.constant 0 : i32
    %c0_i32_0 = arith.constant 0 : i32
    %c0_i32_1 = arith.constant 0 : i32
    return %c0_i32, %c0_i32_0 : i32, i32
  }
  func.func @transform_2(%arg0: i32) -> (i32, i32) {
    %c0_i32 = arith.constant 0 : i32
    %c0_i32_0 = arith.constant 0 : i32
    return %arg0, %c0_i32 : i32, i32
  }
  func.func @transform_3(%arg0: i32) -> (i32, i32) {
    %c0_i32 = arith.constant 0 : i32
    %c0_i32_0 = arith.constant 0 : i32
    %c0_i32_1 = arith.constant 0 : i32
    return %c0_i32, %c0_i32_0 : i32, i32
  }
  func.func @transform_4(%arg0: i32) -> (i32, i32) {
    %c0_i32 = arith.constant 0 : i32
    %c0_i32_0 = arith.constant 0 : i32
    return %arg0, %c0_i32 : i32, i32
  }
}

</mosaic_0001>

<bundles_post_ra>
// kernel: tpu_custom_call.1
= control target key start
LH: loop header
LB: loop body
LE: loop exit
PB: predicated region body
PF: predicated region fallthrough
CT: control target
= control target key end

     0   :  { %9 = vsyncpa [#allocation3], 0  ;;  %s4092_s0 = inlined_call_operand.hbm [shape: bf16[256,1152], index: 0, kind: input, shape index: {}]   ;;  %s4093_s1 = inlined_call_operand.hbm [shape: bf16[1152,128], index: 1, kind: input, shape index: {}]   ;;  %s4094_s2 = inlined_call_operand.hbm [shape: f32[256,128], index: 2, kind: input, shape index: {}]   ;;  %s4095_s3 = inlined_call_operand.vmem [shape: f32[1,128], index: 3, kind: input, shape index: {}]   ;;  %s4096_s4 = inlined_call_operand.hbm [shape: f32[256,128], index: 4, kind: output, shape index: {}]  }
   0x1   :  { %10 = vsyncpa [#allocation6], 0 }
   0x2   :  { %11 = vsyncpa [#allocation4], 0  ;;  %s3627_s15 = smov [#allocation5]   ;;  %s3533_s19 = scalar_lea.hbm %s4093_s1, 9216 }
   0x3   :  { %s29_s16 = sshll.u32 %s3627_s15, 4  ;;  %p3534_p0 = scmp.ne.s32.totalorder %s4093_s1, %s3533_s19  ;;  %s30_s16 = int_to_ptr.vmem [resolvable:$true] %s29_s16 }
   0x4   :  { %p3537_p1 = scmp.lt.u32.totalorder %s3533_s19, %s4093_s1 }
   0x6   :  { %p3539_p2 = pnand %p3537_p1, %p3534_p0 }
   0x8   :  { %3542 = shalt.err (!%p3539_p2)
}
   0x9   :  { %s3543_s24 = scalar_lea.vmem %s30_s16, 9216  ;;  %p3548_p4 = scmp.lt.s32.totalorder %s30_s16, %s30_s16 }
   0xa   :  { %p3544_p3 = scmp.ne.s32.totalorder %s30_s16, %s3543_s24  ;;  %p3549_p5 = scmp.lt.s32.totalorder %s3543_s24, %s3543_s24 }
   0xc   :  { %p3550_p6 = por %p3549_p5, %p3548_p4 }
   0xe   :  { %p3551_p7 = pnand %p3550_p6, %p3544_p3 }
  0x10   :  { %3554 = shalt.err (!%p3551_p7)
}
  0x11   :  { %s3628_s25 = smov 64   ;;  %s3629_s26 = smov 4  }
  0x12   :  { %35 = dma.hbm_to_vmem [thread:$0]  %s4093_s1, 9216, %s30_s16, [#allocation6], %s3628_s25, %s3628_s25, %s3629_s26  }
  0x13   :  { %s3630_s29 = smov [#allocation2]   ;;  %s3555_s7 = scalar_lea.hbm %s4092_s0, 18432 }
  0x14   :  { %s17_s30 = sshll.u32 %s3630_s29, 4  ;;  %p3556_p8 = scmp.ne.s32.totalorder %s4092_s0, %s3555_s7  ;;  %s18_s30 = int_to_ptr.vmem [resolvable:$true] %s17_s30 }
  0x15   :  { %p3559_p9 = scmp.lt.u32.totalorder %s3555_s7, %s4092_s0 }
  0x17   :  { %p3561_p10 = pnand %p3559_p9, %p3556_p8 }
  0x19   :  { %3564 = shalt.err (!%p3561_p10)
}
  0x1a   :  { %s3565_s12 = scalar_lea.vmem %s18_s30, 18432  ;;  %p3570_p12 = scmp.lt.s32.totalorder %s18_s30, %s18_s30 }
  0x1b   :  { %p3566_p11 = scmp.ne.s32.totalorder %s18_s30, %s3565_s12  ;;  %p3571_p13 = scmp.lt.s32.totalorder %s3565_s12, %s3565_s12 }
  0x1d   :  { %p3572_p0 = por %p3571_p13, %p3570_p12 }
  0x1f   :  { %p3573_p1 = pnand %p3572_p0, %p3566_p11 }
  0x21   :  { %3576 = shalt.err (!%p3573_p1)
}
  0x22   :  { %s3631_s1 = smov 576   ;;  %s3632_s13 = smov 36  }
  0x23   :  { %23 = dma.hbm_to_vmem [thread:$0]  %s4092_s0, 18432, %s18_s30, [#allocation3], %s3631_s1, %s3631_s1, %s3632_s13  }
  0x24   :  { %s3633_s16 = smov [#allocation7]   ;;  %s3577_s20 = scalar_lea.hbm %s4094_s2, 4096 }
  0x25   :  { %s41_s17 = sshll.u32 %s3633_s16, 4  ;;  %p3578_p2 = scmp.ne.s32.totalorder %s4094_s2, %s3577_s20  ;;  %s42_s17 = int_to_ptr.vmem [resolvable:$true] %s41_s17 }
  0x26   :  { %p3581_p3 = scmp.lt.u32.totalorder %s3577_s20, %s4094_s2 }
  0x28   :  { %p3583_p4 = pnand %p3581_p3, %p3578_p2 }
  0x2a   :  { %3586 = shalt.err (!%p3583_p4)
}
  0x2b   :  { %s3587_s25 = scalar_lea.vmem %s42_s17, 4096  ;;  %p3592_p6 = scmp.lt.s32.totalorder %s42_s17, %s42_s17 }
  0x2c   :  { %p3588_p5 = scmp.ne.s32.totalorder %s42_s17, %s3587_s25  ;;  %p3593_p7 = scmp.lt.s32.totalorder %s3587_s25, %s3587_s25 }
  0x2e   :  { %p3594_p8 = por %p3593_p7, %p3592_p6 }
  0x30   :  { %p3595_p9 = pnand %p3594_p8, %p3588_p5 }
  0x32   :  { %3598 = shalt.err (!%p3595_p9)
}
  0x33   :  { %s3634_s0 = smov 128   ;;  %s3635_s26 = smov 8  }
  0x34   :  { %47 = dma.hbm_to_vmem [thread:$0]  %s4094_s2, 4096, %s42_s17, [#allocation6], %s3634_s0, %s3634_s0, %s3635_s26  }
  0x35   :  { %3621 = dma.done.wait [#allocation3], 18432  }
  0x36   :  { %3622 = vsyncadd [#allocation3], 4294948864 }
  0x37   :  { %3623 = dma.done.wait [#allocation6], 13312  }
  0x38   :  { %3624 = vsyncadd [#allocation6], 4294953984  ;;  %v3253_v0 = vld [vmem:[#allocation5 + $0x40] sm:$0xff]   ;;  %v3255_v2 = vld [vmem:[#allocation5 + $0x48] sm:$0xff]  }
  0x39   :  { %v3254_v1 = vld [vmem:[#allocation5] sm:$0xff]   ;;  %2707 = vmatprep.subr.bf16.mxu0 %v3253_v0  ;;  %3227 = vmatprep.subr.bf16.mxu1 %v3253_v0  ;;  %v3256_v3 = vld [vmem:[#allocation5 + $0x8] sm:$0xff]   ;;  %v3257_v4 = vld [vmem:[#allocation5 + $0x50] sm:$0xff]  }
  0x3a   :  { %2708 = vmatpush3.bf16.msra.mxu0 %v3254_v1  ;;  %3235 = vmatpush3.bf16.msra.mxu1 %v3254_v1  ;;  %v3258_v5 = vld [vmem:[#allocation5 + $0x10] sm:$0xff]   ;;  %v3259_v6 = vld [vmem:[#allocation5 + $0x58] sm:$0xff]   ;;  %v3261_v8 = vld [vmem:[#allocation5 + $0x60] sm:$0xff]  }
  0x3b   :  { %2709 = vmatprep.subr.bf16.mxu0 %v3255_v2  ;;  %3228 = vmatprep.subr.bf16.mxu1 %v3255_v2  ;;  %v3260_v7 = vld [vmem:[#allocation5 + $0x18] sm:$0xff]   ;;  %v3262_v9 = vld [vmem:[#allocation5 + $0x20] sm:$0xff]   ;;  %v3263_v10 = vld [vmem:[#allocation5 + $0x68] sm:$0xff]  }
  0x3c   :  { %v3271_v11 = vld [vmem:[#allocation2 + $0x4] ss:$36 sps:$4 sm:$0xff]   ;;  %v3265_v14 = vld [vmem:[#allocation5 + $0x70] sm:$0xff]   ;;  %v3267_v16 = vld [vmem:[#allocation5 + $0x78] sm:$0xff]  }
  0x3d   :  { %v3274_v12 = vld [vmem:[#allocation2 + $0x364] ss:$36 sps:$4 sm:$0xff]   ;;  %1635 = vmatprep.mubr.bf16.mxu0 %v3271_v11  ;;  %v3266_v15 = vld [vmem:[#allocation5 + $0x30] sm:$0xff]   ;;  %v3268_v17 = vld [vmem:[#allocation5 + $0x38] sm:$0xff]  }
  0x3e   :  { %2710 = vmatpush3.bf16.msra.mxu0 %v3256_v3  ;;  %3236 = vmatpush3.bf16.msra.mxu1 %v3256_v3  ;;  %v3264_v13 = vld [vmem:[#allocation5 + $0x28] sm:$0xff]   ;;  %v3275_v18 = vld [vmem:[#allocation5 + $0xc0] sm:$0xff]   ;;  %v3287_v31 = vld [vmem:[#allocation5 + $0xd0] sm:$0xff]  }
  0x3f   :  { %2711 = vmatprep.subr.bf16.mxu0 %v3257_v4  ;;  %3229 = vmatprep.subr.bf16.mxu1 %v3257_v4  ;;  %v3269_v19 = vld [vmem:[#allocation2] ss:$36 sps:$4 sm:$0xff]   ;;  %v3277_v23 = vld [vmem:[#allocation5 + $0xc8] sm:$0xff]   ;;  %v3288_v32 = vld [vmem:[#allocation5 + $0x90] sm:$0xff]  }
  0x40   :  { %1731 = vmatprep.mubr.bf16.mxu1 %v3274_v12  ;;  %v3272_v20 = vld [vmem:[#allocation2 + $0x360] ss:$36 sps:$4 sm:$0xff]   ;;  %v3281_v25 = vld [vmem:[#allocation2 + $0x4c] ss:$36 sps:$4 sm:$0xff]   ;;  %v3289_v34 = vld [vmem:[#allocation5 + $0xd8] sm:$0xff]  }
  0x41   :  { %v3278_v21 = vld [vmem:[#allocation5 + $0x140] sm:$0xff]   ;;  %v3283_v26 = vld [vmem:[#allocation2 + $0x3ac] ss:$36 sps:$4 sm:$0xff]   ;;  %v3291_v35 = vld [vmem:[#allocation2 + $0x94] ss:$36 sps:$4 sm:$0xff]  }
  0x42   :  { %2712 = vmatpush3.bf16.msra.mxu0 %v3258_v5  ;;  %3237 = vmatpush3.bf16.msra.mxu1 %v3258_v5  ;;  %v3276_v22 = vld [vmem:[#allocation5 + $0x80] sm:$0xff]   ;;  %v3279_v27 = vld [vmem:[#allocation5 + $0x88] sm:$0xff]   ;;  %v3293_v36 = vld [vmem:[#allocation2 + $0x3f4] ss:$36 sps:$4 sm:$0xff]  }
  0x43   :  { %2713 = vmatprep.subr.bf16.mxu0 %v3259_v6  ;;  %3230 = vmatprep.subr.bf16.mxu1 %v3259_v6  ;;  %v3280_v24 = vld [vmem:[#allocation5 + $0x100] sm:$0xff]   ;;  %v3298_v28 = vld [vmem:[#allocation5 + $0x148] sm:$0xff]   ;;  %v3290_v37 = vld [vmem:[#allocation5 + $0x98] sm:$0xff]  }
  0x44   :  { %v3285_v29 = vld [vmem:[#allocation2 + $0x48] ss:$36 sps:$4 sm:$0xff]   ;;  %v3295_v38 = vld [vmem:[#allocation2 + $0x90] ss:$36 sps:$4 sm:$0xff]   ;;  %v3297_v40 = vld [vmem:[#allocation5 + $0xe0] sm:$0xff]  }
  0x45   :  { %v3286_v30 = vld [vmem:[#allocation2 + $0x3a8] ss:$36 sps:$4 sm:$0xff]   ;;  %v3296_v39 = vld [vmem:[#allocation2 + $0x3f0] ss:$36 sps:$4 sm:$0xff]   ;;  %v3299_v41 = vld [vmem:[#allocation5 + $0xa0] sm:$0xff]  }
  0x46   :  { %2714 = vmatpush3.bf16.msra.mxu0 %v3260_v7  ;;  %3238 = vmatpush3.bf16.msra.mxu1 %v3260_v7  ;;  %v3300_v33 = vld [vmem:[#allocation5 + $0x108] sm:$0xff]   ;;  %v3312_v43 = vld [vmem:[#allocation5 + $0x150] sm:$0xff]   ;;  %v3303_v44 = vld [vmem:[#allocation2 + $0xdc] ss:$36 sps:$4 sm:$0xff]  }
  0x47   :  { %2715 = vmatprep.subr.bf16.mxu0 %v3261_v8  ;;  %3231 = vmatprep.subr.bf16.mxu1 %v3261_v8  ;;  %v3301_v42 = vld [vmem:[#allocation5 + $0xe8] sm:$0xff]   ;;  %v3305_v45 = vld [vmem:[#allocation2 + $0x43c] ss:$36 sps:$4 sm:$0xff]   ;;  %v3314_v46 = vld [vmem:[#allocation5 + $0x110] sm:$0xff]  }
  0x48   :  { %v3302_v47 = vld [vmem:[#allocation5 + $0xa8] sm:$0xff]   ;;  %v3309_v48 = vld [vmem:[#allocation5 + $0xf0] sm:$0xff]   ;;  %v3307_v49 = vld [vmem:[#allocation2 + $0xd8] ss:$36 sps:$4 sm:$0xff]  }
  0x49   :  { %v3308_v50 = vld [vmem:[#allocation2 + $0x438] ss:$36 sps:$4 sm:$0xff]   ;;  %v3310_v51 = vld [vmem:[#allocation5 + $0xb0] sm:$0xff]   ;;  %v3315_v53 = vld [vmem:[#allocation2 + $0x124] ss:$36 sps:$4 sm:$0xff]  }
  0x4a   :  { %2716 = vmatpush3.bf16.msra.mxu0 %v3262_v9  ;;  %3239 = vmatpush3.bf16.msra.mxu1 %v3262_v9  ;;  %v3311_v52 = vld [vmem:[#allocation5 + $0xf8] sm:$0xff]   ;;  %v3319_v54 = vld [vmem:[#allocation2 + $0xc] ss:$36 sps:$4 sm:$0xff]   ;;  %v3320_v59 = vld [vmem:[#allocation2 + $0x120] ss:$36 sps:$4 sm:$0xff]  }
  0x4b   :  { %2717 = vmatprep.subr.bf16.mxu0 %v3263_v10  ;;  %3232 = vmatprep.subr.bf16.mxu1 %v3263_v10  ;;  %v3329_v55 = vld [vmem:[#allocation5 + $0x158] sm:$0xff]   ;;  %v3317_v58 = vld [vmem:[#allocation2 + $0x8] ss:$36 sps:$4 sm:$0xff]   ;;  %v3321_v60 = vld [vmem:[#allocation5 + $0x1c0] sm:$0xff]  }
  0x4c   :  { %v3330_v56 = vld [vmem:[#allocation5 + $0x118] sm:$0xff]   ;;  %v3322_v61 = vld [vmem:[#allocation5 + $0x180] sm:$0xff]   ;;  %v3323_v62 = vld [vmem:[#allocation2 + $0x16c] ss:$36 sps:$4 sm:$0xff]  }
  0x4d   :  { %v3313_v57 = vld [vmem:[#allocation5 + $0xb8] sm:$0xff]   ;;  %v3339_v0 = vld [vmem:[#allocation5 + $0x160] sm:$0xff]   ;;  %v3337_v1 = vld [vmem:[#allocation5 + $0x1c8] sm:$0xff]  }
  0x4e   :  { %2718 = vmatpush3.bf16.msra.mxu0 %v3264_v13  ;;  %3240 = vmatpush3.bf16.msra.mxu1 %v3264_v13  ;;  %v3325_v63 = vld [vmem:[#allocation2 + $0x54] ss:$36 sps:$4 sm:$0xff]   ;;  %v3340_v2 = vld [vmem:[#allocation5 + $0x120] sm:$0xff]   ;;  %v3338_v3 = vld [vmem:[#allocation5 + $0x188] sm:$0xff]  }
  0x4f   :  { %2719 = vmatprep.subr.bf16.mxu0 %v3265_v14  ;;  %3233 = vmatprep.subr.bf16.mxu1 %v3265_v14  ;;  %v3327_v4 = vld [vmem:[#allocation2 + $0x168] ss:$36 sps:$4 sm:$0xff]   ;;  %v3328_v5 = vld [vmem:[#allocation2 + $0x50] ss:$36 sps:$4 sm:$0xff]   ;;  %v3333_v7 = vld [vmem:[#allocation2 + $0x9c] ss:$36 sps:$4 sm:$0xff]  }
  0x50   :  { %v3331_v6 = vld [vmem:[#allocation2 + $0x1b4] ss:$36 sps:$4 sm:$0xff]   ;;  %v3353_v8 = vld [vmem:[#allocation5 + $0x168] sm:$0xff]   ;;  %v3341_v14 = vld [vmem:[#allocation2 + $0x1fc] ss:$36 sps:$4 sm:$0xff]  }
  0x51   :  { %v3354_v9 = vld [vmem:[#allocation5 + $0x1d0] sm:$0xff]   ;;  %v3355_v10 = vld [vmem:[#allocation5 + $0x128] sm:$0xff]   ;;  %v3336_v13 = vld [vmem:[#allocation2 + $0x98] ss:$36 sps:$4 sm:$0xff]  }
  0x52   :  { %2720 = vmatpush3.bf16.msra.mxu0 %v3266_v15  ;;  %3241 = vmatpush3.bf16.msra.mxu1 %v3266_v15  ;;  %v3356_v11 = vld [vmem:[#allocation5 + $0x190] sm:$0xff]  }
  0x53   :  { %2721 = vmatprep.subr.bf16.mxu0 %v3267_v16  ;;  %3234 = vmatprep.subr.bf16.mxu1 %v3267_v16  ;;  %v3335_v12 = vld [vmem:[#allocation2 + $0x1b0] ss:$36 sps:$4 sm:$0xff]  }
  0x54   :  { %v3363_v15 = vld [vmem:[#allocation5 + $0x170] sm:$0xff]  }
  0x55   :  { %v3364_v16 = vld [vmem:[#allocation5 + $0x130] sm:$0xff]  }
  0x56   :  { %2722 = vmatpush3.bf16.msra.mxu0 %v3268_v17  ;;  %3242 = vmatpush3.bf16.msra.mxu1 %v3268_v17  ;;  %v3343_v17 = vld [vmem:[#allocation2 + $0xe4] ss:$36 sps:$4 sm:$0xff]  }
  0x57   :  { %2819 = vmatprep.subr.bf16.mxu1 %v3275_v18  ;;  %2931 = vmatprep.subr.bf16.mxu0 %v3278_v21  ;;  %v3371_v18 = vld [vmem:[#allocation5 + $0x1d8] sm:$0xff]   ;;  %v3346_v21 = vld [vmem:[#allocation2 + $0xe0] ss:$36 sps:$4 sm:$0xff]  }
  0x59   :  { %1636 = vmatmul.mubr.bf16.vlgmr.msra.gmra.mrb[0].mxu0 %v3269_v19  ;;  %1732 = vmatmul.mubr.bf16.vlgmr.msra.gmra.mrb[0].mxu1 %v3272_v20  ;;  %v3372_v19 = vld [vmem:[#allocation5 + $0x198] sm:$0xff]  }
  0x5a   :  { %2820 = vmatpush3.bf16.msra.mxu1 %v3276_v22  ;;  %2932 = vmatpush3.bf16.msra.mxu0 %v3280_v24  ;;  %v3345_v20 = vld [vmem:[#allocation2 + $0x1f8] ss:$36 sps:$4 sm:$0xff]   ;;  %v3347_v22 = vld [vmem:[#allocation2 + $0x244] ss:$36 sps:$4 sm:$0xff]  }
  0x5b   :  { %2821 = vmatprep.subr.bf16.mxu1 %v3277_v23  ;;  %1643 = vmatprep.mubr.bf16.mxu0 %v3281_v25  ;;  %v3349_v23 = vld [vmem:[#allocation2 + $0x12c] ss:$36 sps:$4 sm:$0xff]   ;;  %v3379_v24 = vld [vmem:[#allocation5 + $0x178] sm:$0xff]  }
  0x5c   :  { %1739 = vmatprep.mubr.bf16.mxu1 %v3283_v26  ;;  %2933 = vmatprep.subr.bf16.mxu0 %v3298_v28  ;;  %v3380_v25 = vld [vmem:[#allocation5 + $0x138] sm:$0xff]   ;;  %v3387_v26 = vld [vmem:[#allocation5 + $0x1e0] sm:$0xff]  }
  0x5d   :  { %v3388_v28 = vld [vmem:[#allocation5 + $0x1a0] sm:$0xff]  }
  0x5e   :  { %2822 = vmatpush3.bf16.msra.mxu1 %v3279_v27  ;;  %2934 = vmatpush3.bf16.msra.mxu0 %v3300_v33  ;;  %v3351_v27 = vld [vmem:[#allocation2 + $0x240] ss:$36 sps:$4 sm:$0xff]   ;;  %v3402_v33 = vld [vmem:[#allocation5 + $0x1e8] sm:$0xff]  }
  0x5f   :  { %2823 = vmatprep.subr.bf16.mxu1 %v3287_v31  ;;  %2935 = vmatprep.subr.bf16.mxu0 %v3312_v43  ;;  %v3357_v31 = vld [vmem:[#allocation2 + $0x28c] ss:$36 sps:$4 sm:$0xff]   ;;  %v3373_v43 = vld [vmem:[#allocation2 + $0x31c] ss:$36 sps:$4 sm:$0xff]  }
  0x61   :  { %1644 = vmatmul.mubr.bf16.gmra.mrb[4].mxu0 %v3285_v29  ;;  %1740 = vmatmul.mubr.bf16.gmra.mrb[4].mxu1 %v3286_v30  ;;  %v3389_v29 = vld [vmem:[#allocation5 + $0x200] sm:$0xff]   ;;  %v3352_v30 = vld [vmem:[#allocation2 + $0x128] ss:$36 sps:$4 sm:$0xff]  }
  0x62   :  { %2824 = vmatpush3.bf16.msra.mxu1 %v3288_v32  ;;  %1651 = vmatprep.mubr.bf16.mxu0 %v3291_v35  ;;  %v3359_v32 = vld [vmem:[#allocation2 + $0x174] ss:$36 sps:$4 sm:$0xff]   ;;  %v3403_v35 = vld [vmem:[#allocation5 + $0x1a8] sm:$0xff]  }
  0x63   :  { %2825 = vmatprep.subr.bf16.mxu1 %v3289_v34  ;;  %1747 = vmatprep.mubr.bf16.mxu1 %v3293_v36  ;;  %v3361_v34 = vld [vmem:[#allocation2 + $0x288] ss:$36 sps:$4 sm:$0xff]   ;;  %v3362_v36 = vld [vmem:[#allocation2 + $0x170] ss:$36 sps:$4 sm:$0xff]  }
  0x64   :  { %2936 = vmatpush3.bf16.msra.mxu0 %v3314_v46  ;;  %v3378_v46 = vld [vmem:[#allocation2 + $0x200] ss:$36 sps:$4 sm:$0xff]  }
  0x65   :  { %2937 = vmatprep.subr.bf16.mxu0 %v3329_v55  ;;  %v3404_v55 = vld [vmem:[#allocation5 + $0x208] sm:$0xff]  }
  0x66   :  { %2826 = vmatpush3.bf16.msra.mxu1 %v3290_v37  ;;  %v3365_v37 = vld [vmem:[#allocation2 + $0x2d4] ss:$36 sps:$4 sm:$0xff]  }
  0x67   :  { %2827 = vmatprep.subr.bf16.mxu1 %v3297_v40  ;;  %v3370_v40 = vld [vmem:[#allocation2 + $0x1b8] ss:$36 sps:$4 sm:$0xff]  }
  0x68   :  { %2938 = vmatpush3.bf16.msra.mxu0 %v3330_v56  ;;  %v3419_v56 = vld [vmem:[#allocation5 + $0x210] sm:$0xff]  }
  0x69   :  { %1652 = vmatmul.mubr.bf16.gmra.mrb[8].mxu0 %v3295_v38  ;;  %1748 = vmatmul.mubr.bf16.gmra.mrb[8].mxu1 %v3296_v39  ;;  %v3367_v38 = vld [vmem:[#allocation2 + $0x1bc] ss:$36 sps:$4 sm:$0xff]   ;;  %v3369_v39 = vld [vmem:[#allocation2 + $0x2d0] ss:$36 sps:$4 sm:$0xff]  }
  0x6a   :  { %2828 = vmatpush3.bf16.msra.mxu1 %v3299_v41  ;;  %1659 = vmatprep.mubr.bf16.mxu0 %v3303_v44  ;;  %v3417_v41 = vld [vmem:[#allocation5 + $0x1f0] sm:$0xff]   ;;  %v3375_v44 = vld [vmem:[#allocation2 + $0x204] ss:$36 sps:$4 sm:$0xff]  }
  0x6b   :  { %2829 = vmatprep.subr.bf16.mxu1 %v3301_v42  ;;  %1755 = vmatprep.mubr.bf16.mxu1 %v3305_v45  ;;  %v3418_v42 = vld [vmem:[#allocation5 + $0x1b0] sm:$0xff]   ;;  %v3377_v45 = vld [vmem:[#allocation2 + $0x318] ss:$36 sps:$4 sm:$0xff]  }
  0x6c   :  { %2939 = vmatprep.subr.bf16.mxu0 %v3339_v0  ;;  %v3401_v0 = vld [vmem:[#allocation2 + $0xa0] ss:$36 sps:$4 sm:$0xff]  }
  0x6d   :  { %2940 = vmatpush3.bf16.msra.mxu0 %v3340_v2  ;;  %v3407_v2 = vld [vmem:[#allocation2 + $0xec] ss:$36 sps:$4 sm:$0xff]  }
  0x6e   :  { %2830 = vmatpush3.bf16.msra.mxu1 %v3302_v47  ;;  %2941 = vmatprep.subr.bf16.mxu0 %v3353_v8  ;;  %v3432_v47 = vld [vmem:[#allocation5 + $0x1f8] sm:$0xff]  }
  0x6f   :  { %2831 = vmatprep.subr.bf16.mxu1 %v3309_v48  ;;  %v3433_v48 = vld [vmem:[#allocation5 + $0x1b8] sm:$0xff]  }
  0x70   :  { %v3413_v8 = vld [vmem:[#allocation2 + $0x134] ss:$36 sps:$4 sm:$0xff]  }
  0x71   :  { %1660 = vmatmul.mubr.bf16.gmra.mrb[12].mxu0 %v3307_v49  ;;  %1756 = vmatmul.mubr.bf16.gmra.mrb[12].mxu1 %v3308_v50  ;;  %v3381_v49 = vld [vmem:[#allocation2 + $0x24c] ss:$36 sps:$4 sm:$0xff]   ;;  %v3385_v50 = vld [vmem:[#allocation2 + $0x14] ss:$36 sps:$4 sm:$0xff]  }
  0x72   :  { %2832 = vmatpush3.bf16.msra.mxu1 %v3310_v51  ;;  %1667 = vmatprep.mubr.bf16.mxu0 %v3315_v53  ;;  %v3383_v51 = vld [vmem:[#allocation2 + $0x10] ss:$36 sps:$4 sm:$0xff]  }
  0x73   :  { %2833 = vmatprep.subr.bf16.mxu1 %v3311_v52  ;;  %1796 = vmatprep.mubr.bf16.mxu1 %v3319_v54  ;;  %v3386_v52 = vld [vmem:[#allocation2 + $0x248] ss:$36 sps:$4 sm:$0xff]   ;;  %v3390_v53 = vld [vmem:[#allocation2 + $0x294] ss:$36 sps:$4 sm:$0xff]   ;;  %v3392_v54 = vld [vmem:[#allocation2 + $0x5c] ss:$36 sps:$4 sm:$0xff]  }
  0x74   :  { %2942 = vmatpush3.bf16.msra.mxu0 %v3355_v10  ;;  %v3415_v10 = vld [vmem:[#allocation2 + $0x368] ss:$36 sps:$4 sm:$0xff]  }
  0x75   :  { %2943 = vmatprep.subr.bf16.mxu0 %v3363_v15  ;;  %v3425_v15 = vld [vmem:[#allocation2 + $0x178] ss:$36 sps:$4 sm:$0xff]  }
  0x76   :  { %2834 = vmatpush3.bf16.msra.mxu1 %v3313_v57  ;;  %v3394_v57 = vld [vmem:[#allocation2 + $0x290] ss:$36 sps:$4 sm:$0xff]  }
  0x77   :  { %3043 = vmatprep.subr.bf16.mxu1 %v3321_v60  ;;  %v3398_v60 = vld [vmem:[#allocation2 + $0xa4] ss:$36 sps:$4 sm:$0xff]  }
  0x78   :  { %2944 = vmatpush3.bf16.msra.mxu0 %v3364_v16  ;;  %v3426_v16 = vld [vmem:[#allocation2 + $0x3fc] ss:$36 sps:$4 sm:$0xff]  }
  0x79   :  { %1668 = vmatmul.mubr.bf16.gmra.mrb[16].mxu0 %v3320_v59  ;;  %1797 = vmatmul.mubr.bf16.vlgmr.msra.gmra.mrb[16].mxu1 %v3317_v58  ;;  %v3395_v58 = vld [vmem:[#allocation2 + $0x58] ss:$36 sps:$4 sm:$0xff]  }
  0x7a   :  { %3044 = vmatpush3.bf16.msra.mxu1 %v3322_v61  ;;  %1675 = vmatprep.mubr.bf16.mxu0 %v3323_v62  ;;  %v3396_v59 = vld [vmem:[#allocation2 + $0x2dc] ss:$36 sps:$4 sm:$0xff]  }
  0x7b   :  { %1804 = vmatprep.mubr.bf16.mxu1 %v3325_v63  ;;  %3045 = vmatprep.subr.bf16.mxu1 %v3337_v1  ;;  %v3434_v61 = vld [vmem:[#allocation5 + $0x218] sm:$0xff]   ;;  %v3447_v62 = vld [vmem:[#allocation5 + $0x220] sm:$0xff]  }
  0x7c   :  { %2945 = vmatprep.subr.bf16.mxu0 %v3379_v24  ;;  %v3400_v63 = vld [vmem:[#allocation2 + $0x2d8] ss:$36 sps:$4 sm:$0xff]   ;;  %v3405_v1 = vld [vmem:[#allocation2 + $0x324] ss:$36 sps:$4 sm:$0xff]  }
  0x7d   :  { %2946 = vmatpush3.bf16.msra.mxu0 %v3380_v25  ;;  %v3441_v24 = vld [vmem:[#allocation2 + $0x254] ss:$36 sps:$4 sm:$0xff]   ;;  %v3445_v25 = vld [vmem:[#allocation2 + $0x1c] ss:$36 sps:$4 sm:$0xff]  }
  0x7e   :  { %3046 = vmatpush3.bf16.msra.mxu1 %v3338_v3  ;;  %3179 = vmatprep.subr.bf16.mxu0 %v3389_v29  ;;  %v3460_v3 = vld [vmem:[#allocation5 + $0x228] sm:$0xff]  }
  0x7f   :  { %3047 = vmatprep.subr.bf16.mxu1 %v3354_v9  ;;  %v3486_v9 = vld [vmem:[#allocation5 + $0x238] sm:$0xff]  }
  0x81   :  { %1676 = vmatmul.mubr.bf16.gmra.mrb[20].mxu0 %v3327_v4  ;;  %1805 = vmatmul.mubr.bf16.gmra.mrb[20].mxu1 %v3328_v5  ;;  %v3409_v4 = vld [vmem:[#allocation2 + $0x320] ss:$36 sps:$4 sm:$0xff]   ;;  %v3410_v5 = vld [vmem:[#allocation2 + $0xe8] ss:$36 sps:$4 sm:$0xff]  }
  0x82   :  { %1683 = vmatprep.mubr.bf16.mxu0 %v3331_v6  ;;  %1812 = vmatprep.mubr.bf16.mxu1 %v3333_v7  ;;  %v3473_v6 = vld [vmem:[#allocation5 + $0x230] sm:$0xff]  }
  0x83   :  { %3048 = vmatpush3.bf16.msra.mxu1 %v3356_v11  ;;  %v3411_v7 = vld [vmem:[#allocation2 + $0x36c] ss:$36 sps:$4 sm:$0xff]  }
  0x84   :  { %3049 = vmatprep.subr.bf16.mxu1 %v3371_v18  ;;  %v3416_v11 = vld [vmem:[#allocation2 + $0x130] ss:$36 sps:$4 sm:$0xff]   ;;  %v3430_v18 = vld [vmem:[#allocation2 + $0x3f8] ss:$36 sps:$4 sm:$0xff]  }
  0x87   :  { %3050 = vmatpush3.bf16.msra.mxu1 %v3372_v19  ;;  %v3431_v19 = vld [vmem:[#allocation2 + $0x1c0] ss:$36 sps:$4 sm:$0xff]  }
  0x88   :  { %3051 = vmatprep.subr.bf16.mxu1 %v3387_v26  ;;  %v3443_v26 = vld [vmem:[#allocation2 + $0x18] ss:$36 sps:$4 sm:$0xff]  }
  0x89   :  { %1684 = vmatmul.mubr.bf16.gmra.mrb[24].mxu0 %v3335_v12  ;;  %1813 = vmatmul.mubr.bf16.gmra.mrb[24].mxu1 %v3336_v13  ;;  %v3420_v12 = vld [vmem:[#allocation2 + $0x3b4] ss:$36 sps:$4 sm:$0xff]   ;;  %v3422_v13 = vld [vmem:[#allocation2 + $0x17c] ss:$36 sps:$4 sm:$0xff]  }
  0x8a   :  { %1691 = vmatprep.mubr.bf16.mxu0 %v3341_v14  ;;  %1820 = vmatprep.mubr.bf16.mxu1 %v3343_v17  ;;  %v3424_v14 = vld [vmem:[#allocation2 + $0x3b0] ss:$36 sps:$4 sm:$0xff]   ;;  %v3428_v17 = vld [vmem:[#allocation2 + $0x1c4] ss:$36 sps:$4 sm:$0xff]  }
  0x8b   :  { %3052 = vmatpush3.bf16.msra.mxu1 %v3388_v28  ;;  %v3448_v28 = vld [vmem:[#allocation2 + $0x29c] ss:$36 sps:$4 sm:$0xff]  }
  0x8c   :  { %3053 = vmatprep.subr.bf16.mxu1 %v3402_v33  ;;  %v3456_v33 = vld [vmem:[#allocation2 + $0xac] ss:$36 sps:$4 sm:$0xff]  }
  0x8f   :  { %3054 = vmatpush3.bf16.msra.mxu1 %v3403_v35  ;;  %v3459_v35 = vld [vmem:[#allocation2 + $0xa8] ss:$36 sps:$4 sm:$0xff]  }
  0x90   :  { %3055 = vmatprep.subr.bf16.mxu1 %v3417_v41  ;;  %v3469_v41 = vld [vmem:[#allocation2 + $0x13c] ss:$36 sps:$4 sm:$0xff]  }
  0x91   :  { %1692 = vmatmul.mubr.bf16.gmra.mrb[28].mxu0 %v3345_v20  ;;  %1821 = vmatmul.mubr.bf16.gmra.mrb[28].mxu1 %v3346_v21  ;;  %v3435_v20 = vld [vmem:[#allocation2 + $0x444] ss:$36 sps:$4 sm:$0xff]   ;;  %v3437_v21 = vld [vmem:[#allocation2 + $0x20c] ss:$36 sps:$4 sm:$0xff]  }
  0x92   :  { %1699 = vmatprep.mubr.bf16.mxu0 %v3347_v22  ;;  %1828 = vmatprep.mubr.bf16.mxu1 %v3349_v23  ;;  %v3439_v22 = vld [vmem:[#allocation2 + $0x440] ss:$36 sps:$4 sm:$0xff]   ;;  %v3440_v23 = vld [vmem:[#allocation2 + $0x208] ss:$36 sps:$4 sm:$0xff]  }
  0x93   :  { %3056 = vmatpush3.bf16.msra.mxu1 %v3418_v42  ;;  %v3471_v42 = vld [vmem:[#allocation2 + $0x370] ss:$36 sps:$4 sm:$0xff]  }
  0x94   :  { %3057 = vmatprep.subr.bf16.mxu1 %v3432_v47  ;;  %v3479_v47 = vld [vmem:[#allocation2 + $0x180] ss:$36 sps:$4 sm:$0xff]  }
  0x97   :  { %3058 = vmatpush3.bf16.msra.mxu1 %v3433_v48  ;;  %v3480_v48 = vld [vmem:[#allocation2 + $0x404] ss:$36 sps:$4 sm:$0xff]  }
  0x99   :  { %1700 = vmatmul.mubr.bf16.gmra.mrb[32].mxu0 %v3351_v27  ;;  %1829 = vmatmul.mubr.bf16.gmra.mrb[32].mxu1 %v3352_v30  ;;  %v3446_v27 = vld [vmem:[#allocation2 + $0x250] ss:$36 sps:$4 sm:$0xff]   ;;  %v3452_v30 = vld [vmem:[#allocation2 + $0x298] ss:$36 sps:$4 sm:$0xff]  }
  0x9a   :  { %1707 = vmatprep.mubr.bf16.mxu0 %v3357_v31  ;;  %1836 = vmatprep.mubr.bf16.mxu1 %v3359_v32  ;;  %v3453_v31 = vld [vmem:[#allocation2 + $0x60] ss:$36 sps:$4 sm:$0xff]  }
  0x9b   :  { %v3454_v32 = vld [vmem:[#allocation2 + $0x2e4] ss:$36 sps:$4 sm:$0xff]  }
  0xa1   :  { %1708 = vmatmul.mubr.bf16.gmra.mrb[36].mxu0 %v3361_v34  ;;  %1837 = vmatmul.mubr.bf16.gmra.mrb[36].mxu1 %v3362_v36  ;;  %v3458_v34 = vld [vmem:[#allocation2 + $0x2e0] ss:$36 sps:$4 sm:$0xff]   ;;  %v3461_v36 = vld [vmem:[#allocation2 + $0x32c] ss:$36 sps:$4 sm:$0xff]  }
  0xa2   :  { %1715 = vmatprep.mubr.bf16.mxu0 %v3365_v37  ;;  %1844 = vmatprep.mubr.bf16.mxu1 %v3367_v38  ;;  %v3463_v37 = vld [vmem:[#allocation2 + $0xf4] ss:$36 sps:$4 sm:$0xff]   ;;  %v3465_v38 = vld [vmem:[#allocation2 + $0x328] ss:$36 sps:$4 sm:$0xff]  }
  0xa9   :  { %1716 = vmatmul.mubr.bf16.gmra.mrb[40].mxu0 %v3369_v39  ;;  %1845 = vmatmul.mubr.bf16.gmra.mrb[40].mxu1 %v3370_v40  ;;  %v3466_v39 = vld [vmem:[#allocation2 + $0xf0] ss:$36 sps:$4 sm:$0xff]  }
  0xaa   :  { %1723 = vmatprep.mubr.bf16.mxu0 %v3373_v43  ;;  %1852 = vmatprep.mubr.bf16.mxu1 %v3375_v44  ;;  %v3467_v40 = vld [vmem:[#allocation2 + $0x374] ss:$36 sps:$4 sm:$0xff]   ;;  %v3474_v44 = vld [vmem:[#allocation2 + $0x3bc] ss:$36 sps:$4 sm:$0xff]  }
  0xab   :  { %v3472_v43 = vld [vmem:[#allocation2 + $0x138] ss:$36 sps:$4 sm:$0xff]  }
  0xb1   :  { %1724 = vmatmul.mubr.bf16.gmra.mrb[44].mxu0 %v3377_v45  ;;  %1853 = vmatmul.mubr.bf16.gmra.mrb[44].mxu1 %v3378_v46  ;;  %v3476_v45 = vld [vmem:[#allocation2 + $0x184] ss:$36 sps:$4 sm:$0xff]   ;;  %v3478_v46 = vld [vmem:[#allocation2 + $0x3b8] ss:$36 sps:$4 sm:$0xff]  }
  0xb2   :  { %1860 = vmatprep.mubr.bf16.mxu1 %v3381_v49  ;;  %1957 = vmatprep.mubr.bf16.mxu0 %v3385_v50  ;;  %v3482_v49 = vld [vmem:[#allocation2 + $0x1cc] ss:$36 sps:$4 sm:$0xff]   ;;  %v3484_v50 = vld [vmem:[#allocation2 + $0x400] ss:$36 sps:$4 sm:$0xff]  }
  0xb9   :  { %1861 = vmatmul.mubr.bf16.gmra.mrb[48].mxu1 %v3386_v52  ;;  %1958 = vmatmul.mubr.bf16.vlgmr.msra.gmra.mrb[48].mxu0 %v3383_v51  ;;  %v3485_v51 = vld [vmem:[#allocation2 + $0x1c8] ss:$36 sps:$4 sm:$0xff]  }
  0xba   :  { %3180 = vmatpush3.bf16.msra.mxu0 %v3389_v29  ;;  %1868 = vmatprep.mubr.bf16.mxu1 %v3390_v53  ;;  %v3450_v29 = vld [vmem:[#allocation2 + $0x64] ss:$36 sps:$4 sm:$0xff]   ;;  %v3487_v52 = vld [vmem:[#allocation2 + $0x44c] ss:$36 sps:$4 sm:$0xff]   ;;  %v3489_v53 = vld [vmem:[#allocation2 + $0x214] ss:$36 sps:$4 sm:$0xff]  }
  0xbb   :  { %1965 = vmatprep.mubr.bf16.mxu0 %v3392_v54  ;;  %3181 = vmatprep.subr.bf16.mxu0 %v3404_v55 }
  0xbe   :  { %3182 = vmatpush3.bf16.msra.mxu0 %v3404_v55 }
  0xbf   :  { %3183 = vmatprep.subr.bf16.mxu0 %v3419_v56 }
  0xc1   :  { %1869 = vmatmul.mubr.bf16.gmra.mrb[52].mxu1 %v3394_v57  ;;  %1966 = vmatmul.mubr.bf16.gmra.mrb[52].mxu0 %v3395_v58  ;;  %v3491_v58 = vld [vmem:[#allocation2 + $0x448] ss:$36 sps:$4 sm:$0xff]  }
  0xc2   :  { %1876 = vmatprep.mubr.bf16.mxu1 %v3396_v59  ;;  %1973 = vmatprep.mubr.bf16.mxu0 %v3398_v60  ;;  %v3492_v59 = vld [vmem:[#allocation2 + $0x210] ss:$36 sps:$4 sm:$0xff]  }
  0xc3   :  { %3184 = vmatpush3.bf16.msra.mxu0 %v3419_v56 }
  0xc4   :  { %3185 = vmatprep.subr.bf16.mxu0 %v3434_v61 }
  0xc7   :  { %3186 = vmatpush3.bf16.msra.mxu0 %v3434_v61 }
  0xc8   :  { %3187 = vmatprep.subr.bf16.mxu0 %v3447_v62 }
  0xc9   :  { %1877 = vmatmul.mubr.bf16.gmra.mrb[56].mxu1 %v3400_v63  ;;  %1974 = vmatmul.mubr.bf16.gmra.mrb[56].mxu0 %v3401_v0  ;;  %v3493_v0 = vld [vmem:[#allocation2 + $0x25c] ss:$36 sps:$4 sm:$0xff]  }
  0xca   :  { %1884 = vmatprep.mubr.bf16.mxu1 %v3405_v1  ;;  %1981 = vmatprep.mubr.bf16.mxu0 %v3407_v2  ;;  %v3495_v1 = vld [vmem:[#allocation2 + $0x20] ss:$36 sps:$4 sm:$0xff]  }
  0xcb   :  { %3188 = vmatpush3.bf16.msra.mxu0 %v3447_v62 }
  0xcc   :  { %3189 = vmatprep.subr.bf16.mxu0 %v3460_v3 }
  0xcf   :  { %3190 = vmatpush3.bf16.msra.mxu0 %v3460_v3 }
  0xd0   :  { %3191 = vmatprep.subr.bf16.mxu0 %v3473_v6 }
  0xd1   :  { %1885 = vmatmul.mubr.bf16.gmra.mrb[60].mxu1 %v3409_v4  ;;  %1982 = vmatmul.mubr.bf16.gmra.mrb[60].mxu0 %v3410_v5 }
  0xd2   :  { %1892 = vmatprep.mubr.bf16.mxu1 %v3411_v7  ;;  %1989 = vmatprep.mubr.bf16.mxu0 %v3413_v8 }
  0xd3   :  { %3192 = vmatpush3.bf16.msra.mxu0 %v3473_v6 }
  0xd4   :  { %3193 = vmatprep.subr.bf16.mxu0 %v3486_v9 }
  0xd7   :  { %3194 = vmatpush3.bf16.msra.mxu0 %v3486_v9 }
  0xd9   :  { %1893 = vmatmul.mubr.bf16.gmra.mrb[64].mxu1 %v3415_v10  ;;  %1990 = vmatmul.mubr.bf16.gmra.mrb[64].mxu0 %v3416_v11  ;;  %v3496_v10 = vld [vmem:[#allocation2 + $0x258] ss:$36 sps:$4 sm:$0xff]   ;;  %v3497_v11 = vld [vmem:[#allocation2 + $0x68] ss:$36 sps:$4 sm:$0xff]  }
  0xda   :  { %1900 = vmatprep.mubr.bf16.mxu1 %v3420_v12  ;;  %1997 = vmatprep.mubr.bf16.mxu0 %v3422_v13 }
  0xe1   :  { %1901 = vmatmul.mubr.bf16.gmra.mrb[68].mxu1 %v3424_v14  ;;  %1998 = vmatmul.mubr.bf16.gmra.mrb[68].mxu0 %v3425_v15 }
  0xe2   :  { %1908 = vmatprep.mubr.bf16.mxu1 %v3426_v16  ;;  %2005 = vmatprep.mubr.bf16.mxu0 %v3428_v17  ;;  %v3498_v16 = vld [vmem:[#allocation2 + $0x2a4] ss:$36 sps:$4 sm:$0xff]   ;;  %v3500_v17 = vld [vmem:[#allocation2 + $0xb0] ss:$36 sps:$4 sm:$0xff]  }
  0xe9   :  { %1909 = vmatmul.mubr.bf16.gmra.mrb[72].mxu1 %v3430_v18  ;;  %2006 = vmatmul.mubr.bf16.gmra.mrb[72].mxu0 %v3431_v19 }
  0xea   :  { %1916 = vmatprep.mubr.bf16.mxu1 %v3435_v20  ;;  %2013 = vmatprep.mubr.bf16.mxu0 %v3437_v21 }
  0xf1   :  { %1917 = vmatmul.mubr.bf16.gmra.mrb[76].mxu1 %v3439_v22  ;;  %2014 = vmatmul.mubr.bf16.gmra.mrb[76].mxu0 %v3440_v23 }
  0xf2   :  { %2021 = vmatprep.mubr.bf16.mxu0 %v3441_v24  ;;  %2118 = vmatprep.mubr.bf16.mxu1 %v3445_v25 }
  0xf9   :  { %2022 = vmatmul.mubr.bf16.gmra.mrb[80].mxu0 %v3446_v27  ;;  %2119 = vmatmul.mubr.bf16.vlgmr.msra.gmra.mrb[80].mxu1 %v3443_v26  ;;  %v3501_v26 = vld [vmem:[#allocation2 + $0x2a0] ss:$36 sps:$4 sm:$0xff]   ;;  %v3502_v27 = vld [vmem:[#allocation2 + $0xf8] ss:$36 sps:$4 sm:$0xff]  }
  0xfa   :  { %2029 = vmatprep.mubr.bf16.mxu0 %v3448_v28  ;;  %2126 = vmatprep.mubr.bf16.mxu1 %v3450_v29 }
 0x101   :  { %2030 = vmatmul.mubr.bf16.gmra.mrb[84].mxu0 %v3452_v30  ;;  %2127 = vmatmul.mubr.bf16.gmra.mrb[84].mxu1 %v3453_v31 }
 0x102   :  { %2037 = vmatprep.mubr.bf16.mxu0 %v3454_v32  ;;  %2134 = vmatprep.mubr.bf16.mxu1 %v3456_v33  ;;  %v3503_v32 = vld [vmem:[#allocation2 + $0x2ec] ss:$36 sps:$4 sm:$0xff]   ;;  %v3505_v33 = vld [vmem:[#allocation2 + $0x140] ss:$36 sps:$4 sm:$0xff]  }
 0x109   :  { %2038 = vmatmul.mubr.bf16.gmra.mrb[88].mxu0 %v3458_v34  ;;  %2135 = vmatmul.mubr.bf16.gmra.mrb[88].mxu1 %v3459_v35 }
 0x10a   :  { %2045 = vmatprep.mubr.bf16.mxu0 %v3461_v36  ;;  %2142 = vmatprep.mubr.bf16.mxu1 %v3463_v37 }
 0x111   :  { %2046 = vmatmul.mubr.bf16.gmra.mrb[92].mxu0 %v3465_v38  ;;  %2143 = vmatmul.mubr.bf16.gmra.mrb[92].mxu1 %v3466_v39 }
 0x112   :  { %2053 = vmatprep.mubr.bf16.mxu0 %v3467_v40  ;;  %2150 = vmatprep.mubr.bf16.mxu1 %v3469_v41 }
 0x119   :  { %2054 = vmatmul.mubr.bf16.gmra.mrb[96].mxu0 %v3471_v42  ;;  %2151 = vmatmul.mubr.bf16.gmra.mrb[96].mxu1 %v3472_v43  ;;  %v3506_v42 = vld [vmem:[#allocation2 + $0x2e8] ss:$36 sps:$4 sm:$0xff]  }
 0x11a   :  { %2061 = vmatprep.mubr.bf16.mxu0 %v3474_v44  ;;  %2158 = vmatprep.mubr.bf16.mxu1 %v3476_v45  ;;  %v3507_v43 = vld [vmem:[#allocation2 + $0x188] ss:$36 sps:$4 sm:$0xff]  }
 0x121   :  { %2062 = vmatmul.mubr.bf16.gmra.mrb[100].mxu0 %v3478_v46  ;;  %2159 = vmatmul.mubr.bf16.gmra.mrb[100].mxu1 %v3479_v47 }
 0x122   :  { %2069 = vmatprep.mubr.bf16.mxu0 %v3480_v48  ;;  %2166 = vmatprep.mubr.bf16.mxu1 %v3482_v49  ;;  %v3508_v48 = vld [vmem:[#allocation2 + $0x334] ss:$36 sps:$4 sm:$0xff]  }
 0x123   :  { %v3510_v49 = vld [vmem:[#allocation2 + $0x1d0] ss:$36 sps:$4 sm:$0xff]  }
 0x129   :  { %2070 = vmatmul.mubr.bf16.gmra.mrb[104].mxu0 %v3484_v50  ;;  %2167 = vmatmul.mubr.bf16.gmra.mrb[104].mxu1 %v3485_v51 }
 0x12a   :  { %2077 = vmatprep.mubr.bf16.mxu0 %v3487_v52  ;;  %2174 = vmatprep.mubr.bf16.mxu1 %v3489_v53 }
 0x12c   :  { %v2795_v54 = vpop.f32.mrb[0].mxu1  ;;  %v2723_v55 = vpop.f32.mrb[0].mxu0 }
 0x12d   :  { %v2796_v56 = vpop.f32.mrb[1].mxu1  ;;  %v2724_v57 = vpop.f32.mrb[1].mxu0 }
 0x12e   :  { %v3701_v60 = vadd.f32 %v2796_v56, %v2795_v54  ;;  %v2798_v61 = vpop.f32.mrb[2].mxu1  ;;  %v3703_v62 = vadd.f32 %v2724_v57, %v2723_v55  ;;  %v2726_v63 = vpop.f32.mrb[2].mxu0 }
 0x12f   :  { %v2799_v2 = vpop.f32.mrb[3].mxu1  ;;  %v2727_v3 = vpop.f32.mrb[3].mxu0 }
 0x130   :  { %v3705_v4 = vadd.f32 %v2799_v2, %v2798_v61  ;;  %v3707_v5 = vadd.f32 %v2727_v3, %v2726_v63  ;;  %v3513_v2 = vld [vmem:[#allocation2 + $0x37c] ss:$36 sps:$4 sm:$0xff]  }
 0x131   :  { %2078 = vmatmul.mubr.bf16.gmra.mrb[108].mxu0 %v3491_v58  ;;  %2175 = vmatmul.mubr.bf16.gmra.mrb[108].mxu1 %v3492_v59  ;;  %v3511_v58 = vld [vmem:[#allocation2 + $0x330] ss:$36 sps:$4 sm:$0xff]   ;;  %v3512_v59 = vld [vmem:[#allocation2 + $0x218] ss:$36 sps:$4 sm:$0xff]   ;;  %v3515_v3 = vld [vmem:[#allocation2 + $0x260] ss:$36 sps:$4 sm:$0xff]  }
 0x132   :  { %2182 = vmatprep.mubr.bf16.mxu1 %v3493_v0  ;;  %3195 = vmatprep.mubr.bf16.mxu0 %v3495_v1 }
 0x134   :  { %v2801_v6 = vpop.f32.mrb[4].mxu1  ;;  %v2729_v7 = vpop.f32.mrb[4].mxu0 }
 0x135   :  { %v2802_v8 = vpop.f32.mrb[5].mxu1  ;;  %v2730_v9 = vpop.f32.mrb[5].mxu0 }
 0x136   :  { %v3709_v12 = vadd.f32 %v2802_v8, %v2801_v6  ;;  %v2804_v13 = vpop.f32.mrb[6].mxu1  ;;  %v3711_v14 = vadd.f32 %v2730_v9, %v2729_v7  ;;  %v2732_v15 = vpop.f32.mrb[6].mxu0 }
 0x137   :  { %v2805_v18 = vpop.f32.mrb[7].mxu1  ;;  %v2733_v19 = vpop.f32.mrb[7].mxu0 }
 0x138   :  { %v3713_v20 = vadd.f32 %v2805_v18, %v2804_v13  ;;  %v3715_v21 = vadd.f32 %v2733_v19, %v2732_v15  ;;  %v3516_v18 = vld [vmem:[#allocation2 + $0x378] ss:$36 sps:$4 sm:$0xff]   ;;  %v3517_v19 = vld [vmem:[#allocation2 + $0x2a8] ss:$36 sps:$4 sm:$0xff]  }
 0x139   :  { %2183 = vmatmul.mubr.bf16.gmra.mrb[112].mxu1 %v3496_v10  ;;  %3196 = vmatmul.mubr.bf16.vlgmr.msra.gmra.mrb[112].mxu0 %v3497_v11 }
 0x13a   :  { %2190 = vmatprep.mubr.bf16.mxu1 %v3498_v16  ;;  %3199 = vmatprep.mubr.bf16.mxu0 %v3500_v17 }
 0x13c   :  { %v2807_v22 = vpop.f32.mrb[8].mxu1  ;;  %v2735_v23 = vpop.f32.mrb[8].mxu0 }
 0x13d   :  { %v2808_v24 = vpop.f32.mrb[9].mxu1  ;;  %v2736_v25 = vpop.f32.mrb[9].mxu0 }
 0x13e   :  { %v3717_v28 = vadd.f32 %v2808_v24, %v2807_v22  ;;  %v2810_v29 = vpop.f32.mrb[10].mxu1  ;;  %v3719_v30 = vadd.f32 %v2736_v25, %v2735_v23  ;;  %v2738_v31 = vpop.f32.mrb[10].mxu0  ;;  %v3518_v25 = vld [vmem:[#allocation2 + $0x3c4] ss:$36 sps:$4 sm:$0xff]  }
 0x13f   :  { %v2811_v34 = vpop.f32.mrb[11].mxu1  ;;  %v2739_v35 = vpop.f32.mrb[11].mxu0 }
 0x140   :  { %v3721_v36 = vadd.f32 %v2811_v34, %v2810_v29  ;;  %v3723_v37 = vadd.f32 %v2739_v35, %v2738_v31 }
 0x141   :  { %2191 = vmatmul.mubr.bf16.gmra.mrb[116].mxu1 %v3501_v26  ;;  %3200 = vmatmul.mubr.bf16.gmra.mrb[116].mxu0 %v3502_v27  ;;  %v3520_v26 = vld [vmem:[#allocation2 + $0x2f0] ss:$36 sps:$4 sm:$0xff]  }
 0x142   :  { %2198 = vmatprep.mubr.bf16.mxu1 %v3503_v32  ;;  %3203 = vmatprep.mubr.bf16.mxu0 %v3505_v33 }
 0x144   :  { %v2813_v38 = vpop.f32.mrb[12].mxu1  ;;  %v2741_v39 = vpop.f32.mrb[12].mxu0 }
 0x145   :  { %v2814_v40 = vpop.f32.mrb[13].mxu1  ;;  %v2742_v41 = vpop.f32.mrb[13].mxu0 }
 0x146   :  { %v3725_v44 = vadd.f32 %v2814_v40, %v2813_v38  ;;  %v2816_v45 = vpop.f32.mrb[14].mxu1  ;;  %v3727_v46 = vadd.f32 %v2742_v41, %v2741_v39  ;;  %v2744_v47 = vpop.f32.mrb[14].mxu0  ;;  %v3521_v40 = vld [vmem:[#allocation2 + $0x3c0] ss:$36 sps:$4 sm:$0xff]   ;;  %v3522_v41 = vld [vmem:[#allocation2 + $0x338] ss:$36 sps:$4 sm:$0xff]  }
 0x147   :  { %v2817_v50 = vpop.f32.mrb[15].mxu1  ;;  %v2745_v51 = vpop.f32.mrb[15].mxu0 }
 0x148   :  { %v3729_v52 = vadd.f32 %v2817_v50, %v2816_v45  ;;  %v3731_v53 = vadd.f32 %v2745_v51, %v2744_v47  ;;  %v3523_v47 = vld [vmem:[#allocation2 + $0x40c] ss:$36 sps:$4 sm:$0xff]  }
 0x149   :  { %2199 = vmatmul.mubr.bf16.gmra.mrb[120].mxu1 %v3506_v42  ;;  %3204 = vmatmul.mubr.bf16.gmra.mrb[120].mxu0 %v3507_v43 }
 0x14a   :  { %2206 = vmatprep.mubr.bf16.mxu1 %v3508_v48  ;;  %3207 = vmatprep.mubr.bf16.mxu0 %v3510_v49  ;;  %v3525_v48 = vld [vmem:[#allocation2 + $0x380] ss:$36 sps:$4 sm:$0xff]  }
 0x14c   :  { %v2835_v54 = vpop.f32.mrb[16].mxu1  ;;  %v2747_v55 = vpop.f32.mrb[16].mxu0 }
 0x14d   :  { %v2836_v56 = vpop.f32.mrb[17].mxu1  ;;  %v2748_v57 = vpop.f32.mrb[17].mxu0 }
 0x14e   :  { %v2837_v61 = vadd.f32 %v2836_v56, %v2835_v54  ;;  %v2838_v63 = vpop.f32.mrb[18].mxu1  ;;  %v3733_v0 = vadd.f32 %v2748_v57, %v2747_v55  ;;  %v2750_v1 = vpop.f32.mrb[18].mxu0 }
 0x14f   :  { %v2839_v6 = vpop.f32.mrb[19].mxu1  ;;  %v2751_v7 = vpop.f32.mrb[19].mxu0 }
 0x150   :  { %v3736_v8 = vadd.f32 %v2837_v61, %v3703_v62  ;;  %v2840_v9 = vadd.f32 %v2839_v6, %v2838_v63  ;;  %v3738_v10 = vadd.f32 %v2751_v7, %v2750_v1  ;;  %v3526_v61 = vld [vmem:[#allocation2 + $0x408] ss:$36 sps:$4 sm:$0xff]   ;;  %v3528_v6 = vld [vmem:[#allocation2 + $0x454] ss:$36 sps:$4 sm:$0xff]  }
 0x151   :  { %2207 = vmatmul.mubr.bf16.gmra.mrb[124].mxu1 %v3511_v58  ;;  %3208 = vmatmul.mubr.bf16.gmra.mrb[124].mxu0 %v3512_v59  ;;  %v3527_v63 = vld [vmem:[#allocation2 + $0x3c8] ss:$36 sps:$4 sm:$0xff]   ;;  %v3530_v7 = vld [vmem:[#allocation2 + $0x410] ss:$36 sps:$4 sm:$0xff]  }
 0x152   :  { %v3741_v11 = vadd.f32 %v2840_v9, %v3707_v5  ;;  %2214 = vmatprep.mubr.bf16.mxu1 %v3513_v2  ;;  %3211 = vmatprep.mubr.bf16.mxu0 %v3515_v3 }
 0x154   :  { %v2841_v13 = vpop.f32.mrb[20].mxu1  ;;  %v2753_v15 = vpop.f32.mrb[20].mxu0 }
 0x155   :  { %v2842_v16 = vpop.f32.mrb[21].mxu1  ;;  %v2754_v17 = vpop.f32.mrb[21].mxu0 }
 0x156   :  { %v2843_v22 = vadd.f32 %v2842_v16, %v2841_v13  ;;  %v2844_v23 = vpop.f32.mrb[22].mxu1  ;;  %v3743_v62 = vadd.f32 %v2754_v17, %v2753_v15  ;;  %v2756_v24 = vpop.f32.mrb[22].mxu0 }
 0x157   :  { %v2845_v27 = vpop.f32.mrb[23].mxu1  ;;  %v2757_v29 = vpop.f32.mrb[23].mxu0 }
 0x158   :  { %v3746_v5 = vadd.f32 %v2843_v22, %v3711_v14  ;;  %v2846_v31 = vadd.f32 %v2845_v27, %v2844_v23  ;;  %v3748_v32 = vadd.f32 %v2757_v29, %v2756_v24  ;;  %v3531_v24 = vld [vmem:[#allocation2 + $0x450] ss:$36 sps:$4 sm:$0xff]  }
 0x159   :  { %2215 = vmatmul.mubr.bf16.gmra.mrb[128].mxu1 %v3516_v18  ;;  %3212 = vmatmul.mubr.bf16.gmra.mrb[128].mxu0 %v3517_v19 }
 0x15a   :  { %v3751_v33 = vadd.f32 %v2846_v31, %v3715_v21  ;;  %2222 = vmatprep.mubr.bf16.mxu1 %v3518_v25  ;;  %3215 = vmatprep.mubr.bf16.mxu0 %v3520_v26  ;;  %v3532_v25 = vld [vmem:[#allocation2 + $0x458] ss:$36 sps:$4 sm:$0xff]  }
 0x15c   :  { %v2847_v34 = vpop.f32.mrb[24].mxu1  ;;  %v2759_v35 = vpop.f32.mrb[24].mxu0 }
 0x15d   :  { %v2848_v38 = vpop.f32.mrb[25].mxu1  ;;  %v2760_v39 = vpop.f32.mrb[25].mxu0 }
 0x15e   :  { %v2849_v42 = vadd.f32 %v2848_v38, %v2847_v34  ;;  %v2850_v43 = vpop.f32.mrb[26].mxu1  ;;  %v3753_v14 = vadd.f32 %v2760_v39, %v2759_v35  ;;  %v2762_v45 = vpop.f32.mrb[26].mxu0 }
 0x15f   :  { %v2851_v49 = vpop.f32.mrb[27].mxu1  ;;  %v2763_v50 = vpop.f32.mrb[27].mxu0 }
 0x160   :  { %v3756_v21 = vadd.f32 %v2849_v42, %v3719_v30  ;;  %v2852_v51 = vadd.f32 %v2851_v49, %v2850_v43  ;;  %v3758_v54 = vadd.f32 %v2763_v50, %v2762_v45 }
 0x161   :  { %2223 = vmatmul.mubr.bf16.gmra.mrb[132].mxu1 %v3521_v40  ;;  %3216 = vmatmul.mubr.bf16.gmra.mrb[132].mxu0 %v3522_v41 }
 0x162   :  { %v3761_v55 = vadd.f32 %v2852_v51, %v3723_v37  ;;  %2230 = vmatprep.mubr.bf16.mxu1 %v3523_v47  ;;  %3219 = vmatprep.mubr.bf16.mxu0 %v3525_v48 }
 0x164   :  { %v2853_v56 = vpop.f32.mrb[28].mxu1  ;;  %v2765_v57 = vpop.f32.mrb[28].mxu0 }
 0x165   :  { %v2854_v58 = vpop.f32.mrb[29].mxu1  ;;  %v2766_v59 = vpop.f32.mrb[29].mxu0 }
 0x166   :  { %v2855_v1 = vadd.f32 %v2854_v58, %v2853_v56  ;;  %v2856_v2 = vpop.f32.mrb[30].mxu1  ;;  %v3763_v30 = vadd.f32 %v2766_v59, %v2765_v57  ;;  %v2768_v3 = vpop.f32.mrb[30].mxu0 }
 0x167   :  { %v2857_v9 = vpop.f32.mrb[31].mxu1  ;;  %v2769_v13 = vpop.f32.mrb[31].mxu0 }
 0x168   :  { %v3766_v37 = vadd.f32 %v2855_v1, %v3727_v46  ;;  %v2858_v15 = vadd.f32 %v2857_v9, %v2856_v2  ;;  %v3768_v16 = vadd.f32 %v2769_v13, %v2768_v3 }
 0x169   :  { %2231 = vmatmul.mubr.bf16.gmra.mrb[136].mxu1 %v3526_v61  ;;  %3220 = vmatmul.mubr.bf16.gmra.mrb[136].mxu0 %v3527_v63 }
 0x16a   :  { %v3771_v17 = vadd.f32 %v2858_v15, %v3731_v53  ;;  %2238 = vmatprep.mubr.bf16.mxu1 %v3528_v6  ;;  %3223 = vmatprep.mubr.bf16.mxu0 %v3530_v7 }
 0x16c   :  { %v2859_v18 = vpop.f32.mrb[32].mxu1  ;;  %v2771_v19 = vpop.f32.mrb[32].mxu0 }
 0x16d   :  { %v2860_v22 = vpop.f32.mrb[33].mxu1  ;;  %v2772_v23 = vpop.f32.mrb[33].mxu0 }
 0x16e   :  { %v2861_v26 = vadd.f32 %v2860_v22, %v2859_v18  ;;  %v2862_v27 = vpop.f32.mrb[34].mxu1  ;;  %v2773_v46 = vadd.f32 %v2772_v23, %v2771_v19  ;;  %v2774_v29 = vpop.f32.mrb[34].mxu0 }
 0x16f   :  { %v2863_v31 = vpop.f32.mrb[35].mxu1  ;;  %v2775_v34 = vpop.f32.mrb[35].mxu0 }
 0x170   :  { %v3774_v35 = vadd.f32 %v2861_v26, %v3733_v0  ;;  %v2864_v38 = vadd.f32 %v2863_v31, %v2862_v27  ;;  %v2776_v53 = vadd.f32 %v2775_v34, %v2774_v29 }
 0x171   :  { %2239 = vmatmul.mubr.bf16.gmra.mrb[140].mxu1 %v3531_v24  ;;  %3224 = vmatmul.mubr.bf16.gmra.mrb[140].mxu0 %v3532_v25 }
 0x172   :  { %v3777_v39 = vadd.f32 %v2864_v38, %v3738_v10 }
 0x174   :  { %v2865_v40 = vpop.f32.mrb[36].mxu1  ;;  %v2777_v41 = vpop.f32.mrb[36].mxu0 }
 0x175   :  { %v2866_v42 = vpop.f32.mrb[37].mxu1  ;;  %v2778_v43 = vpop.f32.mrb[37].mxu0 }
 0x176   :  { %v2867_v45 = vadd.f32 %v2866_v42, %v2865_v40  ;;  %v2868_v47 = vpop.f32.mrb[38].mxu1  ;;  %v2779_v48 = vadd.f32 %v2778_v43, %v2777_v41  ;;  %v2780_v49 = vpop.f32.mrb[38].mxu0 }
 0x177   :  { %v2869_v50 = vpop.f32.mrb[39].mxu1  ;;  %v2781_v51 = vpop.f32.mrb[39].mxu0 }
 0x178   :  { %v3780_v0 = vadd.f32 %v2867_v45, %v3743_v62  ;;  %v2870_v56 = vadd.f32 %v2869_v50, %v2868_v47  ;;  %v2782_v57 = vadd.f32 %v2781_v51, %v2780_v49 }
 0x17a   :  { %v3783_v58 = vadd.f32 %v2870_v56, %v3748_v32 }
 0x17c   :  { %v2871_v10 = vpop.f32.mrb[40].mxu1  ;;  %v2783_v59 = vpop.f32.mrb[40].mxu0 }
 0x17d   :  { %v2872_v61 = vpop.f32.mrb[41].mxu1  ;;  %v2784_v63 = vpop.f32.mrb[41].mxu0 }
 0x17e   :  { %v2873_v1 = vadd.f32 %v2872_v61, %v2871_v10  ;;  %v2874_v2 = vpop.f32.mrb[42].mxu1  ;;  %v3785_v3 = vadd.f32 %v2784_v63, %v2783_v59  ;;  %v2786_v6 = vpop.f32.mrb[42].mxu0 }
 0x17f   :  { %v2875_v7 = vpop.f32.mrb[43].mxu1  ;;  %v2787_v9 = vpop.f32.mrb[43].mxu0 }
 0x180   :  { %v3788_v13 = vadd.f32 %v2873_v1, %v3753_v14  ;;  %v2876_v62 = vadd.f32 %v2875_v7, %v2874_v2  ;;  %v2788_v15 = vadd.f32 %v2787_v9, %v2786_v6 }
 0x182   :  { %v3791_v18 = vadd.f32 %v2876_v62, %v3758_v54 }
 0x184   :  { %v2877_v32 = vpop.f32.mrb[44].mxu1  ;;  %v2789_v19 = vpop.f32.mrb[44].mxu0 }
 0x185   :  { %v2878_v22 = vpop.f32.mrb[45].mxu1  ;;  %v2790_v23 = vpop.f32.mrb[45].mxu0 }
 0x186   :  { %v2879_v24 = vadd.f32 %v2878_v22, %v2877_v32  ;;  %v2880_v25 = vpop.f32.mrb[46].mxu1  ;;  %v3793_v26 = vadd.f32 %v2790_v23, %v2789_v19  ;;  %v2792_v27 = vpop.f32.mrb[46].mxu0 }
 0x187   :  { %v2881_v29 = vpop.f32.mrb[47].mxu1  ;;  %v2793_v31 = vpop.f32.mrb[47].mxu0 }
 0x188   :  { %v3796_v34 = vadd.f32 %v2879_v24, %v3763_v30  ;;  %v2882_v14 = vadd.f32 %v2881_v29, %v2880_v25  ;;  %v3798_v38 = vadd.f32 %v2793_v31, %v2792_v27 }
 0x18a   :  { %v3801_v54 = vadd.f32 %v2882_v14, %v3768_v16 }
 0x18c   :  { %v2883_v40 = vpop.f32.mrb[48].mxu1  ;;  %v2947_v41 = vpop.f32.mrb[48].mxu0 }
 0x18d   :  { %v2884_v42 = vpop.f32.mrb[49].mxu1  ;;  %v2948_v43 = vpop.f32.mrb[49].mxu0 }
 0x18e   :  { %v2885_v45 = vadd.f32 %v2884_v42, %v2883_v40  ;;  %v2949_v47 = vadd.f32 %v2948_v43, %v2947_v41  ;;  %v2886_v49 = vpop.f32.mrb[50].mxu1  ;;  %v2950_v50 = vpop.f32.mrb[50].mxu0 }
 0x18f   :  { %v2887_v51 = vpop.f32.mrb[51].mxu1  ;;  %v2951_v56 = vpop.f32.mrb[51].mxu0 }
 0x190   :  { %v3803_v10 = vadd.f32 %v2885_v45, %v2773_v46  ;;  %v3806_v30 = vadd.f32 %v2949_v47, %v3736_v8  ;;  %v2888_v59 = vadd.f32 %v2887_v51, %v2886_v49  ;;  %v2952_v61 = vadd.f32 %v2951_v56, %v2950_v50 }
 0x192   :  { %v3808_v63 = vadd.f32 %v2888_v59, %v2776_v53  ;;  %v3811_v16 = vadd.f32 %v2952_v61, %v3741_v11 }
 0x194   :  { %v2889_v1 = vpop.f32.mrb[52].mxu1  ;;  %v2953_v2 = vpop.f32.mrb[52].mxu0 }
 0x195   :  { %v2890_v6 = vpop.f32.mrb[53].mxu1  ;;  %v2954_v7 = vpop.f32.mrb[53].mxu0 }
 0x196   :  { %v2891_v9 = vadd.f32 %v2890_v6, %v2889_v1  ;;  %v2955_v62 = vadd.f32 %v2954_v7, %v2953_v2  ;;  %v2892_v32 = vpop.f32.mrb[54].mxu1  ;;  %v2956_v19 = vpop.f32.mrb[54].mxu0 }
 0x197   :  { %v2893_v46 = vpop.f32.mrb[55].mxu1  ;;  %v2957_v22 = vpop.f32.mrb[55].mxu0 }
 0x198   :  { %v3813_v23 = vadd.f32 %v2891_v9, %v2779_v48  ;;  %v3816_v8 = vadd.f32 %v2955_v62, %v3746_v5  ;;  %v2894_v53 = vadd.f32 %v2893_v46, %v2892_v32  ;;  %v2958_v24 = vadd.f32 %v2957_v22, %v2956_v19 }
 0x19a   :  { %v3818_v25 = vadd.f32 %v2894_v53, %v2782_v57  ;;  %v3821_v11 = vadd.f32 %v2958_v24, %v3751_v33 }
 0x19c   :  { %v2895_v27 = vpop.f32.mrb[56].mxu1  ;;  %v2959_v29 = vpop.f32.mrb[56].mxu0 }
 0x19d   :  { %v2896_v31 = vpop.f32.mrb[57].mxu1  ;;  %v2960_v14 = vpop.f32.mrb[57].mxu0 }
 0x19e   :  { %v2897_v40 = vadd.f32 %v2896_v31, %v2895_v27  ;;  %v2961_v41 = vadd.f32 %v2960_v14, %v2959_v29  ;;  %v2898_v42 = vpop.f32.mrb[58].mxu1  ;;  %v2962_v43 = vpop.f32.mrb[58].mxu0 }
 0x19f   :  { %v2899_v48 = vpop.f32.mrb[59].mxu1  ;;  %v2963_v45 = vpop.f32.mrb[59].mxu0 }
 0x1a0   :  { %v3824_v5 = vadd.f32 %v2897_v40, %v3785_v3  ;;  %v3827_v47 = vadd.f32 %v2961_v41, %v3756_v21  ;;  %v2900_v57 = vadd.f32 %v2899_v48, %v2898_v42  ;;  %v2964_v49 = vadd.f32 %v2963_v45, %v2962_v43 }
 0x1a2   :  { %v3829_v33 = vadd.f32 %v2900_v57, %v2788_v15  ;;  %v3832_v50 = vadd.f32 %v2964_v49, %v3761_v55 }
 0x1a4   :  { %v2901_v51 = vpop.f32.mrb[60].mxu1  ;;  %v2965_v56 = vpop.f32.mrb[60].mxu0 }
 0x1a5   :  { %v2902_v59 = vpop.f32.mrb[61].mxu1  ;;  %v2966_v61 = vpop.f32.mrb[61].mxu0 }
 0x1a6   :  { %v2903_v1 = vadd.f32 %v2902_v59, %v2901_v51  ;;  %v2967_v2 = vadd.f32 %v2966_v61, %v2965_v56  ;;  %v2904_v6 = vpop.f32.mrb[62].mxu1  ;;  %v2968_v7 = vpop.f32.mrb[62].mxu0 }
 0x1a7   :  { %v2905_v3 = vpop.f32.mrb[63].mxu1  ;;  %v2969_v9 = vpop.f32.mrb[63].mxu0 }
 0x1a8   :  { %v3835_v21 = vadd.f32 %v2903_v1, %v3793_v26  ;;  %v3838_v62 = vadd.f32 %v2967_v2, %v3766_v37  ;;  %v2906_v15 = vadd.f32 %v2905_v3, %v2904_v6  ;;  %v2970_v32 = vadd.f32 %v2969_v9, %v2968_v7 }
 0x1aa   :  { %v3841_v55 = vadd.f32 %v2906_v15, %v3798_v38  ;;  %v3844_v19 = vadd.f32 %v2970_v32, %v3771_v17 }
 0x1ac   :  { %v2907_v46 = vpop.f32.mrb[64].mxu1  ;;  %v2971_v22 = vpop.f32.mrb[64].mxu0 }
 0x1ad   :  { %v2908_v53 = vpop.f32.mrb[65].mxu1  ;;  %v2972_v24 = vpop.f32.mrb[65].mxu0 }
 0x1ae   :  { %v2909_v27 = vadd.f32 %v2908_v53, %v2907_v46  ;;  %v2973_v29 = vadd.f32 %v2972_v24, %v2971_v22  ;;  %v2910_v31 = vpop.f32.mrb[66].mxu1  ;;  %v2974_v26 = vpop.f32.mrb[66].mxu0 }
 0x1af   :  { %v2911_v14 = vpop.f32.mrb[67].mxu1  ;;  %v2975_v40 = vpop.f32.mrb[67].mxu0 }
 0x1b0   :  { %v3847_v37 = vadd.f32 %v2909_v27, %v3701_v60  ;;  %v3850_v41 = vadd.f32 %v2973_v29, %v3774_v35  ;;  %v2912_v38 = vadd.f32 %v2911_v14, %v2910_v31  ;;  %v2976_v42 = vadd.f32 %v2975_v40, %v2974_v26 }
 0x1b2   :  { %v3853_v17 = vadd.f32 %v2912_v38, %v3705_v4  ;;  %v3856_v43 = vadd.f32 %v2976_v42, %v3777_v39 }
 0x1b4   :  { %v2913_v48 = vpop.f32.mrb[68].mxu1  ;;  %v2977_v45 = vpop.f32.mrb[68].mxu0 }
 0x1b5   :  { %v2914_v57 = vpop.f32.mrb[69].mxu1  ;;  %v2978_v49 = vpop.f32.mrb[69].mxu0 }
 0x1b6   :  { %v2915_v51 = vadd.f32 %v2914_v57, %v2913_v48  ;;  %v2979_v56 = vadd.f32 %v2978_v49, %v2977_v45  ;;  %v2916_v59 = vpop.f32.mrb[70].mxu1  ;;  %v2980_v60 = vpop.f32.mrb[70].mxu0 }
 0x1b7   :  { %v2917_v61 = vpop.f32.mrb[71].mxu1  ;;  %v2981_v1 = vpop.f32.mrb[71].mxu0 }
 0x1b8   :  { %v3859_v35 = vadd.f32 %v2915_v51, %v3709_v12  ;;  %v3862_v2 = vadd.f32 %v2979_v56, %v3780_v0  ;;  %v2918_v4 = vadd.f32 %v2917_v61, %v2916_v59  ;;  %v2982_v6 = vadd.f32 %v2981_v1, %v2980_v60 }
 0x1ba   :  { %v3865_v39 = vadd.f32 %v2918_v4, %v3713_v20  ;;  %v3868_v7 = vadd.f32 %v2982_v6, %v3783_v58 }
 0x1bc   :  { %v2919_v3 = vpop.f32.mrb[72].mxu1  ;;  %v2983_v9 = vpop.f32.mrb[72].mxu0 }
 0x1bd   :  { %v2920_v15 = vpop.f32.mrb[73].mxu1  ;;  %v2984_v32 = vpop.f32.mrb[73].mxu0 }
 0x1be   :  { %v2921_v46 = vadd.f32 %v2920_v15, %v2919_v3  ;;  %v2985_v22 = vadd.f32 %v2984_v32, %v2983_v9  ;;  %v2922_v53 = vpop.f32.mrb[74].mxu1  ;;  %v2986_v12 = vpop.f32.mrb[74].mxu0 }
 0x1bf   :  { %v2923_v24 = vpop.f32.mrb[75].mxu1  ;;  %v2987_v27 = vpop.f32.mrb[75].mxu0 }
 0x1c0   :  { %v3871_v0 = vadd.f32 %v2921_v46, %v3717_v28  ;;  %v3874_v29 = vadd.f32 %v2985_v22, %v3788_v13  ;;  %v2924_v20 = vadd.f32 %v2923_v24, %v2922_v53  ;;  %v2988_v31 = vadd.f32 %v2987_v27, %v2986_v12 }
 0x1c2   :  { %v3877_v58 = vadd.f32 %v2924_v20, %v3721_v36  ;;  %v3880_v26 = vadd.f32 %v2988_v31, %v3791_v18 }
 0x1c4   :  { %v2925_v14 = vpop.f32.mrb[76].mxu1  ;;  %v2989_v40 = vpop.f32.mrb[76].mxu0 }
 0x1c5   :  { %v2926_v38 = vpop.f32.mrb[77].mxu1  ;;  %v2990_v42 = vpop.f32.mrb[77].mxu0 }
 0x1c6   :  { %v2927_v48 = vadd.f32 %v2926_v38, %v2925_v14  ;;  %v2991_v45 = vadd.f32 %v2990_v42, %v2989_v40  ;;  %v2928_v57 = vpop.f32.mrb[78].mxu1  ;;  %v2992_v28 = vpop.f32.mrb[78].mxu0 }
 0x1c7   :  { %v2929_v49 = vpop.f32.mrb[79].mxu1  ;;  %v2993_v51 = vpop.f32.mrb[79].mxu0 }
 0x1c8   :  { %v3883_v13 = vadd.f32 %v2927_v48, %v3725_v44  ;;  %v3886_v56 = vadd.f32 %v2991_v45, %v3796_v34  ;;  %v2930_v36 = vadd.f32 %v2929_v49, %v2928_v57  ;;  %v2994_v59 = vadd.f32 %v2993_v51, %v2992_v28 }
 0x1ca   :  { %v3889_v18 = vadd.f32 %v2930_v36, %v3729_v52  ;;  %v3892_v60 = vadd.f32 %v2994_v59, %v3801_v54 }
 0x1cc   :  { %v2995_v61 = vpop.f32.mrb[80].mxu0  ;;  %v3059_v1 = vpop.f32.mrb[80].mxu1 }
 0x1cd   :  { %v2996_v4 = vpop.f32.mrb[81].mxu0  ;;  %v3060_v6 = vpop.f32.mrb[81].mxu1 }
 0x1ce   :  { %v2997_v3 = vadd.f32 %v2996_v4, %v2995_v61  ;;  %v3061_v9 = vadd.f32 %v3060_v6, %v3059_v1  ;;  %v2998_v15 = vpop.f32.mrb[82].mxu0  ;;  %v3062_v44 = vpop.f32.mrb[82].mxu1 }
 0x1cf   :  { %v2999_v32 = vpop.f32.mrb[83].mxu0  ;;  %v3063_v46 = vpop.f32.mrb[83].mxu1 }
 0x1d0   :  { %v3895_v34 = vadd.f32 %v2997_v3, %v3803_v10  ;;  %v3000_v22 = vadd.f32 %v2999_v32, %v2998_v15  ;;  %v3064_v53 = vadd.f32 %v3063_v46, %v3062_v44  ;;  %v3898_v52 = vadd.f32 %v3061_v9, %v3806_v30 }
 0x1d2   :  { %v3901_v54 = vadd.f32 %v3000_v22, %v3808_v63  ;;  %v3904_v12 = vadd.f32 %v3064_v53, %v3811_v16 }
 0x1d4   :  { %v3001_v24 = vpop.f32.mrb[84].mxu0  ;;  %v3065_v27 = vpop.f32.mrb[84].mxu1 }
 0x1d5   :  { %v3002_v20 = vpop.f32.mrb[85].mxu0  ;;  %v3066_v31 = vpop.f32.mrb[85].mxu1 }
 0x1d6   :  { %v3003_v14 = vadd.f32 %v3002_v20, %v3001_v24  ;;  %v3067_v40 = vadd.f32 %v3066_v31, %v3065_v27  ;;  %v3004_v38 = vpop.f32.mrb[86].mxu0  ;;  %v3068_v10 = vpop.f32.mrb[86].mxu1 }
 0x1d7   :  { %v3005_v42 = vpop.f32.mrb[87].mxu0  ;;  %v3069_v48 = vpop.f32.mrb[87].mxu1 }
 0x1d8   :  { %v3907_v45 = vadd.f32 %v3003_v14, %v3813_v23  ;;  %v3006_v30 = vadd.f32 %v3005_v42, %v3004_v38  ;;  %v3070_v57 = vadd.f32 %v3069_v48, %v3068_v10  ;;  %v3910_v63 = vadd.f32 %v3067_v40, %v3816_v8 }
 0x1da   :  { %v3913_v16 = vadd.f32 %v3006_v30, %v3818_v25  ;;  %v3916_v28 = vadd.f32 %v3070_v57, %v3821_v11 }
 0x1dc   :  { %v3007_v49 = vpop.f32.mrb[88].mxu0  ;;  %v3071_v51 = vpop.f32.mrb[88].mxu1 }
 0x1dd   :  { %v3008_v36 = vpop.f32.mrb[89].mxu0  ;;  %v3072_v59 = vpop.f32.mrb[89].mxu1 }
 0x1de   :  { %v3009_v61 = vadd.f32 %v3008_v36, %v3007_v49  ;;  %v3073_v1 = vadd.f32 %v3072_v59, %v3071_v51  ;;  %v3010_v4 = vpop.f32.mrb[90].mxu0  ;;  %v3074_v23 = vpop.f32.mrb[90].mxu1 }
 0x1df   :  { %v3011_v6 = vpop.f32.mrb[91].mxu0  ;;  %v3075_v3 = vpop.f32.mrb[91].mxu1 }
 0x1e0   :  { %v3919_v9 = vadd.f32 %v3009_v61, %v3824_v5  ;;  %v3012_v8 = vadd.f32 %v3011_v6, %v3010_v4  ;;  %v3076_v15 = vadd.f32 %v3075_v3, %v3074_v23  ;;  %v3922_v25 = vadd.f32 %v3073_v1, %v3827_v47 }
 0x1e2   :  { %v3925_v11 = vadd.f32 %v3012_v8, %v3829_v33  ;;  %v3928_v44 = vadd.f32 %v3076_v15, %v3832_v50 }
 0x1e4   :  { %v3013_v32 = vpop.f32.mrb[92].mxu0  ;;  %v3077_v46 = vpop.f32.mrb[92].mxu1 }
 0x1e5   :  { %v3014_v22 = vpop.f32.mrb[93].mxu0  ;;  %v3078_v53 = vpop.f32.mrb[93].mxu1 }
 0x1e6   :  { %v3015_v24 = vadd.f32 %v3014_v22, %v3013_v32  ;;  %v3079_v27 = vadd.f32 %v3078_v53, %v3077_v46  ;;  %v3016_v20 = vpop.f32.mrb[94].mxu0  ;;  %v3080_v5 = vpop.f32.mrb[94].mxu1 }
 0x1e7   :  { %v3017_v31 = vpop.f32.mrb[95].mxu0  ;;  %v3081_v14 = vpop.f32.mrb[95].mxu1 }
 0x1e8   :  { %v3931_v40 = vadd.f32 %v3015_v24, %v3835_v21  ;;  %v3018_v47 = vadd.f32 %v3017_v31, %v3016_v20  ;;  %v3082_v38 = vadd.f32 %v3081_v14, %v3080_v5  ;;  %v3934_v33 = vadd.f32 %v3079_v27, %v3838_v62 }
 0x1ea   :  { %v3937_v50 = vadd.f32 %v3018_v47, %v3841_v55  ;;  %v3940_v10 = vadd.f32 %v3082_v38, %v3844_v19 }
 0x1ec   :  { %v3019_v42 = vpop.f32.mrb[96].mxu0  ;;  %v3083_v48 = vpop.f32.mrb[96].mxu1 }
 0x1ed   :  { %v3020_v30 = vpop.f32.mrb[97].mxu0  ;;  %v3084_v57 = vpop.f32.mrb[97].mxu1 }
 0x1ee   :  { %v3021_v49 = vadd.f32 %v3020_v30, %v3019_v42  ;;  %v3085_v51 = vadd.f32 %v3084_v57, %v3083_v48  ;;  %v3022_v36 = vpop.f32.mrb[98].mxu0  ;;  %v3086_v21 = vpop.f32.mrb[98].mxu1 }
 0x1ef   :  { %v3023_v59 = vpop.f32.mrb[99].mxu0  ;;  %v3087_v61 = vpop.f32.mrb[99].mxu1 }
 0x1f0   :  { %v3943_v1 = vadd.f32 %v3021_v49, %v3847_v37  ;;  %v3024_v62 = vadd.f32 %v3023_v59, %v3022_v36  ;;  %v3088_v4 = vadd.f32 %v3087_v61, %v3086_v21  ;;  %v3946_v55 = vadd.f32 %v3085_v51, %v3850_v41 }
 0x1f2   :  { %v3949_v19 = vadd.f32 %v3024_v62, %v3853_v17  ;;  %v3952_v23 = vadd.f32 %v3088_v4, %v3856_v43 }
 0x1f4   :  { %v3025_v6 = vpop.f32.mrb[100].mxu0  ;;  %v3089_v3 = vpop.f32.mrb[100].mxu1 }
 0x1f5   :  { %v3026_v8 = vpop.f32.mrb[101].mxu0  ;;  %v3090_v15 = vpop.f32.mrb[101].mxu1 }
 0x1f6   :  { %v3027_v32 = vadd.f32 %v3026_v8, %v3025_v6  ;;  %v3091_v46 = vadd.f32 %v3090_v15, %v3089_v3  ;;  %v3028_v22 = vpop.f32.mrb[102].mxu0  ;;  %v3092_v37 = vpop.f32.mrb[102].mxu1 }
 0x1f7   :  { %v3029_v53 = vpop.f32.mrb[103].mxu0  ;;  %v3093_v24 = vpop.f32.mrb[103].mxu1 }
 0x1f8   :  { %v3955_v27 = vadd.f32 %v3027_v32, %v3859_v35  ;;  %v3030_v41 = vadd.f32 %v3029_v53, %v3028_v22  ;;  %v3094_v20 = vadd.f32 %v3093_v24, %v3092_v37  ;;  %v3958_v17 = vadd.f32 %v3091_v46, %v3862_v2  ;;  %v60_v53 = vld [vmem:[#allocation7] sm:$0xff] }
 0x1fa   :  { %v3961_v43 = vadd.f32 %v3030_v41, %v3865_v39  ;;  %v3964_v5 = vadd.f32 %v3094_v20, %v3868_v7  ;;  %v63_v41 = vld [vmem:[#allocation7 + $0x18] sm:$0xff] }
 0x1fc   :  { %v3031_v31 = vpop.f32.mrb[104].mxu0  ;;  %v3095_v14 = vpop.f32.mrb[104].mxu1 }
 0x1fd   :  { %v3032_v47 = vpop.f32.mrb[105].mxu0  ;;  %v3096_v38 = vpop.f32.mrb[105].mxu1 }
 0x1fe   :  { %v3033_v42 = vadd.f32 %v3032_v47, %v3031_v31  ;;  %v3097_v48 = vadd.f32 %v3096_v38, %v3095_v14  ;;  %v3034_v30 = vpop.f32.mrb[106].mxu0  ;;  %v3098_v35 = vpop.f32.mrb[106].mxu1  ;;  %v61_v31 = vld [vmem:[#allocation7 + $0x8] sm:$0xff] }
 0x1ff   :  { %v3035_v57 = vpop.f32.mrb[107].mxu0  ;;  %v3099_v49 = vpop.f32.mrb[107].mxu1 }
 0x200   :  { %v3967_v51 = vadd.f32 %v3033_v42, %v3871_v0  ;;  %v3036_v2 = vadd.f32 %v3035_v57, %v3034_v30  ;;  %v3100_v36 = vadd.f32 %v3099_v49, %v3098_v35  ;;  %v3970_v39 = vadd.f32 %v3097_v48, %v3874_v29 }
 0x202   :  { %v3973_v7 = vadd.f32 %v3036_v2, %v3877_v58  ;;  %v3976_v21 = vadd.f32 %v3100_v36, %v3880_v26  ;;  %v62_v58 = vld [vmem:[#allocation7 + $0x10] sm:$0xff]  ;;  %v3984_v26 = vld [vmem:[%s4095_s3] ss:$0 sm:$0xff]  ;;  %s3636_s3 = smov [#allocation8]  }
 0x203   :  { %v99_v38 = vadd.f32 %v3984_v26, %v60_v53  ;;  %v102_v30 = vadd.f32 %v3984_v26, %v63_v41  ;;  %s2477_s30 = sshll.u32 %s3636_s3, 4  ;;  %s2478_s30 = int_to_ptr.vmem [resolvable:$true] %s2477_s30 }
 0x204   :  { %v3037_v59 = vpop.f32.mrb[108].mxu0  ;;  %v3101_v61 = vpop.f32.mrb[108].mxu1  ;;  %s3599_s5 = scalar_lea.vmem %s2478_s30, 4096  ;;  %p3604_p11 = scmp.lt.s32.totalorder %s2478_s30, %s2478_s30 }
 0x205   :  { %v3038_v62 = vpop.f32.mrb[109].mxu0  ;;  %v3102_v4 = vpop.f32.mrb[109].mxu1  ;;  %p3600_p10 = scmp.ne.s32.totalorder %s2478_s30, %s3599_s5  ;;  %p3605_p12 = scmp.lt.s32.totalorder %s3599_s5, %s3599_s5 }
 0x206   :  { %v3039_v6 = vadd.f32 %v3038_v62, %v3037_v59  ;;  %v3103_v3 = vadd.f32 %v3102_v4, %v3101_v61  ;;  %v3040_v8 = vpop.f32.mrb[110].mxu0  ;;  %v3104_v0 = vpop.f32.mrb[110].mxu1 }
 0x207   :  { %v3041_v15 = vpop.f32.mrb[111].mxu0  ;;  %v3105_v32 = vpop.f32.mrb[111].mxu1  ;;  %p3606_p13 = por %p3605_p12, %p3604_p11 }
 0x208   :  { %v3979_v46 = vadd.f32 %v3039_v6, %v3883_v13  ;;  %v3042_v29 = vadd.f32 %v3041_v15, %v3040_v8  ;;  %v3106_v22 = vadd.f32 %v3105_v32, %v3104_v0  ;;  %v3987_v37 = vadd.f32 %v3103_v3, %v3886_v56  ;;  %v66_v6 = vld [vmem:[#allocation7 + $0x30] sm:$0xff]  ;;  %v67_v15 = vld [vmem:[#allocation7 + $0x38] sm:$0xff] }
 0x209   :  { %v101_v13 = vadd.f32 %v3984_v26, %v62_v58  ;;  %p3607_p0 = pnand %p3606_p13, %p3600_p10 }
 0x20a   :  { %v3990_v24 = vadd.f32 %v3042_v29, %v3889_v18  ;;  %v3993_v20 = vadd.f32 %v3106_v22, %v3892_v60  ;;  %v100_v60 = vadd.f32 %v3984_v26, %v61_v31  ;;  %v65_v29 = vld [vmem:[#allocation7 + $0x28] sm:$0xff] }
 0x20c   :  { %v3107_v14 = vpop.f32.mrb[112].mxu1  ;;  %v3197_v47 = vpop.f32.mrb[112].mxu0 }
 0x20d   :  { %v2290_v42 = vadd.f32 %v3197_v47, %v3910_v63  ;;  %v3108_v48 = vpop.f32.mrb[113].mxu1  ;;  %v2281_v56 = vpop.f32.mrb[113].mxu0 }
 0x20e   :  { %v3109_v35 = vadd.f32 %v3108_v48, %v3107_v14  ;;  %v2282_v18 = vadd.f32 %v2281_v56, %v3898_v52  ;;  %v3110_v57 = vpop.f32.mrb[114].mxu1  ;;  %v3198_v49 = vpop.f32.mrb[114].mxu0  ;;  %v64_v52 = vld [vmem:[#allocation7 + $0x20] sm:$0xff] }
 0x20f   :  { %v2410_v2 = vadd.f32 %v2290_v42, %v101_v13  ;;  %v2293_v36 = vadd.f32 %v3198_v49, %v3916_v28  ;;  %v3111_v59 = vpop.f32.mrb[115].mxu1  ;;  %v2284_v61 = vpop.f32.mrb[115].mxu0  ;;  %v105_v28 = vadd.f32 %v3984_v26, %v66_v6  ;;  %v103_v58 = vadd.f32 %v3984_v26, %v64_v52 }
 0x210   :  { %v2408_v62 = vadd.f32 %v2282_v18, %v99_v38  ;;  %v3112_v4 = vadd.f32 %v3111_v59, %v3110_v57  ;;  %v2285_v63 = vadd.f32 %v2284_v61, %v3904_v12  ;;  %v4004_v3 = vadd.f32 %v3109_v35, %v3895_v34  ;;  %v70_v57 = vld [vmem:[#allocation7 + $0x50] sm:$0xff]  ;;  %v69_v61 = vld [vmem:[#allocation7 + $0x48] sm:$0xff] }
 0x211   :  { %2442 = vst [vmem:[#allocation8 + $0x10] sm:$0xff] %v2410_v2  ;;  %v2411_v8 = vadd.f32 %v2293_v36, %v102_v30  ;;  %v106_v13 = vadd.f32 %v3984_v26, %v67_v15  ;;  %v104_v38 = vadd.f32 %v3984_v26, %v65_v29  ;;  %v71_v36 = vld [vmem:[#allocation7 + $0x58] sm:$0xff] }
 0x212   :  { %2440 = vst [vmem:[#allocation8] sm:$0xff] %v2408_v62  ;;  %v2409_v0 = vadd.f32 %v2285_v63, %v100_v60  ;;  %v4007_v32 = vadd.f32 %v3112_v4, %v3901_v54 }
 0x213   :  { %2443 = vst [vmem:[#allocation8 + $0x18] sm:$0xff] %v2411_v8  ;;  %v110_v8 = vadd.f32 %v3984_v26, %v71_v36 }
 0x214   :  { %2441 = vst [vmem:[#allocation8 + $0x8] sm:$0xff] %v2409_v0  ;;  %v3113_v22 = vpop.f32.mrb[116].mxu1  ;;  %v3201_v12 = vpop.f32.mrb[116].mxu0 }
 0x215   :  { %v2306_v34 = vadd.f32 %v3201_v12, %v3934_v33  ;;  %v3114_v53 = vpop.f32.mrb[117].mxu1  ;;  %v2297_v41 = vpop.f32.mrb[117].mxu0 }
 0x216   :  { %v3115_v31 = vadd.f32 %v3114_v53, %v3113_v22  ;;  %v2298_v14 = vadd.f32 %v2297_v41, %v3922_v25  ;;  %v3116_v54 = vpop.f32.mrb[118].mxu1  ;;  %v3202_v47 = vpop.f32.mrb[118].mxu0  ;;  %v68_v25 = vld [vmem:[#allocation7 + $0x40] sm:$0xff]  ;;  %v74_v41 = vld [vmem:[#allocation7 + $0x70] sm:$0xff] }
 0x217   :  { %v2414_v42 = vadd.f32 %v2306_v34, %v105_v28  ;;  %v2309_v48 = vadd.f32 %v3202_v47, %v3940_v10  ;;  %v3117_v56 = vpop.f32.mrb[119].mxu1  ;;  %v2300_v30 = vpop.f32.mrb[119].mxu0  ;;  %v109_v10 = vadd.f32 %v3984_v26, %v70_v57  ;;  %v107_v4 = vadd.f32 %v3984_v26, %v68_v25 }
 0x218   :  { %v2412_v35 = vadd.f32 %v2298_v14, %v103_v58  ;;  %v3118_v18 = vadd.f32 %v3117_v56, %v3116_v54  ;;  %v2301_v33 = vadd.f32 %v2300_v30, %v3928_v44  ;;  %v4018_v49 = vadd.f32 %v3115_v31, %v3907_v45  ;;  %v75_v54 = vld [vmem:[#allocation7 + $0x78] sm:$0xff] }
 0x219   :  { %2446 = vst [vmem:[#allocation8 + $0x30] sm:$0xff] %v2414_v42  ;;  %v2415_v60 = vadd.f32 %v2309_v48, %v106_v13  ;;  %v108_v28 = vadd.f32 %v3984_v26, %v69_v61 }
 0x21a   :  { %2444 = vst [vmem:[#allocation8 + $0x20] sm:$0xff] %v2412_v35  ;;  %v2413_v2 = vadd.f32 %v2301_v33, %v104_v38  ;;  %v4021_v59 = vadd.f32 %v3118_v18, %v3913_v16  ;;  %v73_v38 = vld [vmem:[#allocation7 + $0x68] sm:$0xff]  ;;  %v114_v35 = vadd.f32 %v3984_v26, %v75_v54  ;;  %v82_v54 = vld [vmem:[#allocation7 + $0xb0] sm:$0xff] }
 0x21b   :  { %2447 = vst [vmem:[#allocation8 + $0x38] sm:$0xff] %v2415_v60  ;;  %v112_v60 = vadd.f32 %v3984_v26, %v73_v38 }
 0x21c   :  { %2445 = vst [vmem:[#allocation8 + $0x28] sm:$0xff] %v2413_v2  ;;  %v3119_v62 = vpop.f32.mrb[120].mxu1  ;;  %v3205_v44 = vpop.f32.mrb[120].mxu0 }
 0x21d   :  { %v2322_v45 = vadd.f32 %v3205_v44, %v3958_v17  ;;  %v3120_v63 = vpop.f32.mrb[121].mxu1  ;;  %v2313_v6 = vpop.f32.mrb[121].mxu0  ;;  %v78_v44 = vld [vmem:[#allocation7 + $0x90] sm:$0xff] }
 0x21e   :  { %v3121_v52 = vadd.f32 %v3120_v63, %v3119_v62  ;;  %v2314_v0 = vadd.f32 %v2313_v6, %v3946_v55  ;;  %v3122_v16 = vpop.f32.mrb[122].mxu1  ;;  %v3206_v15 = vpop.f32.mrb[122].mxu0  ;;  %v72_v55 = vld [vmem:[#allocation7 + $0x60] sm:$0xff]  ;;  %v79_v6 = vld [vmem:[#allocation7 + $0x98] sm:$0xff] }
 0x21f   :  { %v2418_v29 = vadd.f32 %v2322_v45, %v109_v10  ;;  %v2325_v22 = vadd.f32 %v3206_v15, %v3964_v5  ;;  %v3123_v12 = vpop.f32.mrb[123].mxu1  ;;  %v2316_v58 = vpop.f32.mrb[123].mxu0  ;;  %v113_v5 = vadd.f32 %v3984_v26, %v74_v41  ;;  %v111_v48 = vadd.f32 %v3984_v26, %v72_v55  ;;  %v76_v63 = vld [vmem:[#allocation7 + $0x80] sm:$0xff] }
 0x220   :  { %v2416_v34 = vadd.f32 %v2314_v0, %v107_v4  ;;  %v3124_v53 = vadd.f32 %v3123_v12, %v3122_v16  ;;  %v2317_v17 = vadd.f32 %v2316_v58, %v3952_v23  ;;  %v4032_v13 = vadd.f32 %v3121_v52, %v3919_v9  ;;  %v77_v52 = vld [vmem:[#allocation7 + $0x88] sm:$0xff] }
 0x221   :  { %2450 = vst [vmem:[#allocation8 + $0x50] sm:$0xff] %v2418_v29  ;;  %v2419_v31 = vadd.f32 %v2325_v22, %v110_v8  ;;  %v118_v29 = vadd.f32 %v3984_v26, %v79_v6  ;;  %v87_v6 = vld [vmem:[#allocation7 + $0xd8] sm:$0xff] }
 0x222   :  { %2448 = vst [vmem:[#allocation8 + $0x40] sm:$0xff] %v2416_v34  ;;  %v2417_v14 = vadd.f32 %v2317_v17, %v108_v28  ;;  %v4035_v47 = vadd.f32 %v3124_v53, %v3925_v11  ;;  %v116_v34 = vadd.f32 %v3984_v26, %v77_v52  ;;  %v85_v52 = vld [vmem:[#allocation7 + $0xc8] sm:$0xff] }
 0x223   :  { %2451 = vst [vmem:[#allocation8 + $0x58] sm:$0xff] %v2419_v31 }
 0x224   :  { %2449 = vst [vmem:[#allocation8 + $0x48] sm:$0xff] %v2417_v14  ;;  %v3125_v42 = vpop.f32.mrb[124].mxu1  ;;  %v3209_v23 = vpop.f32.mrb[124].mxu0 }
 0x225   :  { %v2338_v9 = vadd.f32 %v3209_v23, %v3987_v37  ;;  %v3126_v56 = vpop.f32.mrb[125].mxu1  ;;  %v2329_v30 = vpop.f32.mrb[125].mxu0  ;;  %v83_v23 = vld [vmem:[#allocation7 + $0xb8] sm:$0xff] }
 0x226   :  { %v3127_v18 = vadd.f32 %v3126_v56, %v3125_v42  ;;  %v2330_v33 = vadd.f32 %v2329_v30, %v3970_v39  ;;  %v3128_v11 = vpop.f32.mrb[126].mxu1  ;;  %v3210_v57 = vpop.f32.mrb[126].mxu0  ;;  %v80_v42 = vld [vmem:[#allocation7 + $0xa0] sm:$0xff] }
 0x227   :  { %v2422_v25 = vadd.f32 %v2338_v9, %v113_v5  ;;  %v2341_v2 = vadd.f32 %v3210_v57, %v3993_v20  ;;  %v3129_v36 = vpop.f32.mrb[127].mxu1  ;;  %v2332_v10 = vpop.f32.mrb[127].mxu0  ;;  %v117_v20 = vadd.f32 %v3984_v26, %v78_v44  ;;  %v81_v9 = vld [vmem:[#allocation7 + $0xa8] sm:$0xff] }
 0x228   :  { %v2420_v61 = vadd.f32 %v2330_v33, %v111_v48  ;;  %v3130_v62 = vadd.f32 %v3129_v36, %v3128_v11  ;;  %v2333_v37 = vadd.f32 %v2332_v10, %v3976_v21  ;;  %v2209_v4 = vadd.f32 %v3127_v18, %v3931_v40 }
 0x229   :  { %2454 = vst [vmem:[#allocation8 + $0x70] sm:$0xff] %v2422_v25  ;;  %v2423_v45 = vadd.f32 %v2341_v2, %v114_v35  ;;  %v115_v21 = vadd.f32 %v3984_v26, %v76_v63  ;;  %v122_v33 = vadd.f32 %v3984_v26, %v83_v23  ;;  %v90_v23 = vld [vmem:[#allocation7 + $0xf0] sm:$0xff] }
 0x22a   :  { %2452 = vst [vmem:[#allocation8 + $0x60] sm:$0xff] %v2420_v61  ;;  %v2421_v39 = vadd.f32 %v2333_v37, %v112_v60  ;;  %v2212_v8 = vadd.f32 %v3130_v62, %v3937_v50 }
 0x22b   :  { %2455 = vst [vmem:[#allocation8 + $0x78] sm:$0xff] %v2423_v45 }
 0x22c   :  { %2453 = vst [vmem:[#allocation8 + $0x68] sm:$0xff] %v2421_v39  ;;  %v3131_v0 = vpop.f32.mrb[128].mxu1  ;;  %v3213_v16 = vpop.f32.mrb[128].mxu0  ;;  %v84_v39 = vld [vmem:[#allocation7 + $0xc0] sm:$0xff] }
 0x22d   :  { %v2354_v15 = vadd.f32 %v3213_v16, %v4018_v49  ;;  %v3132_v40 = vpop.f32.mrb[129].mxu1  ;;  %v2345_v28 = vpop.f32.mrb[129].mxu0 }
 0x22e   :  { %v3133_v22 = vadd.f32 %v3132_v40, %v3131_v0  ;;  %v2346_v12 = vadd.f32 %v2345_v28, %v4004_v3  ;;  %v3134_v58 = vpop.f32.mrb[130].mxu1  ;;  %v3214_v50 = vpop.f32.mrb[130].mxu0  ;;  %v126_v40 = vadd.f32 %v3984_v26, %v87_v6 }
 0x22f   :  { %v2426_v53 = vadd.f32 %v2354_v15, %v117_v20  ;;  %v2357_v17 = vadd.f32 %v3214_v50, %v4021_v59  ;;  %v3135_v41 = vpop.f32.mrb[131].mxu1  ;;  %v2348_v31 = vpop.f32.mrb[131].mxu0  ;;  %v121_v59 = vadd.f32 %v3984_v26, %v82_v54 }
 0x230   :  { %v2424_v55 = vadd.f32 %v2346_v12, %v115_v21  ;;  %v3136_v14 = vadd.f32 %v3135_v41, %v3134_v58  ;;  %v2349_v49 = vadd.f32 %v2348_v31, %v4007_v32  ;;  %v2217_v5 = vadd.f32 %v3133_v22, %v3943_v1 }
 0x231   :  { %2458 = vst [vmem:[#allocation8 + $0x90] sm:$0xff] %v2426_v53  ;;  %v2427_v38 = vadd.f32 %v2357_v17, %v118_v29  ;;  %v119_v32 = vadd.f32 %v3984_v26, %v80_v42 }
 0x232   :  { %2456 = vst [vmem:[#allocation8 + $0x80] sm:$0xff] %v2424_v55  ;;  %v2425_v3 = vadd.f32 %v2349_v49, %v116_v34  ;;  %v2220_v48 = vadd.f32 %v3136_v14, %v3949_v19  ;;  %v120_v19 = vadd.f32 %v3984_v26, %v81_v9  ;;  %v88_v49 = vld [vmem:[#allocation7 + $0xe0] sm:$0xff] }
 0x233   :  { %2459 = vst [vmem:[#allocation8 + $0x98] sm:$0xff] %v2427_v38  ;;  %v89_v38 = vld [vmem:[#allocation7 + $0xe8] sm:$0xff] }
 0x234   :  { %2457 = vst [vmem:[#allocation8 + $0x88] sm:$0xff] %v2425_v3  ;;  %v3137_v56 = vpop.f32.mrb[132].mxu1  ;;  %v3217_v30 = vpop.f32.mrb[132].mxu0 }
 0x235   :  { %v2370_v35 = vadd.f32 %v3217_v30, %v2209_v4  ;;  %v3138_v18 = vpop.f32.mrb[133].mxu1  ;;  %v2361_v1 = vpop.f32.mrb[133].mxu0  ;;  %v86_v4 = vld [vmem:[#allocation7 + $0xd0] sm:$0xff] }
 0x236   :  { %v3139_v11 = vadd.f32 %v3138_v18, %v3137_v56  ;;  %v2362_v57 = vadd.f32 %v2361_v1, %v4032_v13  ;;  %v3140_v60 = vpop.f32.mrb[134].mxu1  ;;  %v3218_v25 = vpop.f32.mrb[134].mxu0  ;;  %v129_v18 = vadd.f32 %v3984_v26, %v90_v23  ;;  %v91_v1 = vld [vmem:[#allocation7 + $0xf8] sm:$0xff] }
 0x237   :  { %v2430_v2 = vadd.f32 %v2370_v35, %v121_v59  ;;  %v2373_v36 = vadd.f32 %v3218_v25, %v2212_v8  ;;  %v3141_v10 = vpop.f32.mrb[135].mxu1  ;;  %v2364_v61 = vpop.f32.mrb[135].mxu0  ;;  %v125_v8 = vadd.f32 %v3984_v26, %v86_v4  ;;  %v127_v59 = vadd.f32 %v3984_v26, %v88_v49 }
 0x238   :  { %v2428_v62 = vadd.f32 %v2362_v57, %v119_v32  ;;  %v3142_v37 = vadd.f32 %v3141_v10, %v3140_v60  ;;  %v2365_v44 = vadd.f32 %v2364_v61, %v4035_v47  ;;  %v2225_v45 = vadd.f32 %v3139_v11, %v3955_v27 }
 0x239   :  { %2462 = vst [vmem:[#allocation8 + $0xb0] sm:$0xff] %v2430_v2  ;;  %v2431_v63 = vadd.f32 %v2373_v36, %v122_v33  ;;  %v123_v47 = vadd.f32 %v3984_v26, %v84_v39  ;;  %v128_v35 = vadd.f32 %v3984_v26, %v89_v38  ;;  %v130_v2 = vadd.f32 %v3984_v26, %v91_v1 }
 0x23a   :  { %2460 = vst [vmem:[#allocation8 + $0xa0] sm:$0xff] %v2428_v62  ;;  %v2429_v13 = vadd.f32 %v2365_v44, %v120_v19  ;;  %v2228_v20 = vadd.f32 %v3142_v37, %v3961_v43  ;;  %v124_v43 = vadd.f32 %v3984_v26, %v85_v52 }
 0x23b   :  { %2463 = vst [vmem:[#allocation8 + $0xb8] sm:$0xff] %v2431_v63 }
 0x23c   :  { %2461 = vst [vmem:[#allocation8 + $0xa8] sm:$0xff] %v2429_v13  ;;  %v3143_v0 = vpop.f32.mrb[136].mxu1  ;;  %v3221_v16 = vpop.f32.mrb[136].mxu0 }
 0x23d   :  { %v2386_v21 = vadd.f32 %v3221_v16, %v2225_v45  ;;  %v3144_v15 = vpop.f32.mrb[137].mxu1  ;;  %v2377_v27 = vpop.f32.mrb[137].mxu0 }
 0x23e   :  { %v3145_v28 = vadd.f32 %v3144_v15, %v3143_v0  ;;  %v2378_v29 = vadd.f32 %v2377_v27, %v2217_v5  ;;  %v3146_v22 = vpop.f32.mrb[138].mxu1  ;;  %v3222_v12 = vpop.f32.mrb[138].mxu0 }
 0x23f   :  { %v2434_v58 = vadd.f32 %v2386_v21, %v125_v8  ;;  %v2389_v50 = vadd.f32 %v3222_v12, %v2228_v20  ;;  %v3147_v34 = vpop.f32.mrb[139].mxu1  ;;  %v2380_v53 = vpop.f32.mrb[139].mxu0 }
 0x240   :  { %v2432_v17 = vadd.f32 %v2378_v29, %v123_v47  ;;  %v3148_v41 = vadd.f32 %v3147_v34, %v3146_v22  ;;  %v2381_v31 = vadd.f32 %v2380_v53, %v2220_v48  ;;  %v2233_v55 = vadd.f32 %v3145_v28, %v3967_v51 }
 0x241   :  { %2466 = vst [vmem:[#allocation8 + $0xd0] sm:$0xff] %v2434_v58  ;;  %v2435_v14 = vadd.f32 %v2389_v50, %v126_v40 }
 0x242   :  { %2464 = vst [vmem:[#allocation8 + $0xc0] sm:$0xff] %v2432_v17  ;;  %v2433_v54 = vadd.f32 %v2381_v31, %v124_v43  ;;  %v2236_v5 = vadd.f32 %v3148_v41, %v3973_v7 }
 0x243   :  { %2467 = vst [vmem:[#allocation8 + $0xd8] sm:$0xff] %v2435_v14 }
 0x244   :  { %2465 = vst [vmem:[#allocation8 + $0xc8] sm:$0xff] %v2433_v54  ;;  %v3149_v42 = vpop.f32.mrb[140].mxu1  ;;  %v3225_v3 = vpop.f32.mrb[140].mxu0 }
 0x245   :  { %v3150_v9 = vpop.f32.mrb[141].mxu1  ;;  %v2393_v56 = vpop.f32.mrb[141].mxu0 }
 0x246   :  { %v3151_v48 = vadd.f32 %v3150_v9, %v3149_v42  ;;  %v2394_v30 = vadd.f32 %v2393_v56, %v2233_v55  ;;  %v3152_v51 = vpop.f32.mrb[142].mxu1  ;;  %v3226_v32 = vpop.f32.mrb[142].mxu0 }
 0x247   :  { %v3153_v7 = vpop.f32.mrb[143].mxu1  ;;  %v2396_v33 = vpop.f32.mrb[143].mxu0 }
 0x248   :  { %v2241_v11 = vadd.f32 %v3151_v48, %v3979_v46  ;;  %v2436_v57 = vadd.f32 %v2394_v30, %v127_v59  ;;  %v3154_v60 = vadd.f32 %v3153_v7, %v3152_v51  ;;  %v2397_v25 = vadd.f32 %v2396_v33, %v2236_v5 }
 0x24a   :  { %v2402_v19 = vadd.f32 %v3225_v3, %v2241_v11  ;;  %2468 = vst [vmem:[#allocation8 + $0xe0] sm:$0xff] %v2436_v57  ;;  %v2244_v36 = vadd.f32 %v3154_v60, %v3990_v24  ;;  %v2437_v10 = vadd.f32 %v2397_v25, %v128_v35 }
 0x24c   :  { %v2438_v61 = vadd.f32 %v2402_v19, %v129_v18  ;;  %v2405_v62 = vadd.f32 %v3226_v32, %v2244_v36  ;;  %2469 = vst [vmem:[#allocation8 + $0xe8] sm:$0xff] %v2437_v10 }
 0x24e   :  { %2470 = vst [vmem:[#allocation8 + $0xf0] sm:$0xff] %v2438_v61  ;;  %v2439_v37 = vadd.f32 %v2405_v62, %v130_v2 }
 0x250   :  { %2471 = vst [vmem:[#allocation8 + $0xf8] sm:$0xff] %v2439_v37 }
 0x251   :  { %3610 = shalt.err (!%p3607_p0)
}
 0x252   :  { %s3611_s8 = scalar_lea.hbm %s4096_s4, 4096 }
 0x253   :  { %p3612_p1 = scmp.ne.s32.totalorder %s4096_s4, %s3611_s8  ;;  %p3615_p2 = scmp.lt.u32.totalorder %s3611_s8, %s4096_s4 }
 0x255   :  { %p3617_p3 = pnand %p3615_p2, %p3612_p1 }
 0x257   :  { %3620 = shalt.err (!%p3617_p3)
}
 0x258   :  { %2483 = dma.vmem_to_hbm [thread:$0]  %s2478_s30, 4096, %s4096_s4, [#allocation4], %s3634_s0, %s3634_s0, %s3635_s26  }
 0x259   :  { %3625 = dma.done.wait [#allocation4], 4096  }
 0x25a   :  { %3626 = vsyncadd [#allocation4], 4294963200 }
 0x25b   :  { %2487 = vsyncpa [#allocation3], 1 }
 0x25c   :  { %2488 = vsyncpa [#allocation6], 1 }
 0x25d   :  { %2489 = vsyncpa [#allocation4], 1 }

</bundles_post_ra>
